<compile_context>
chip_gen: v5e
topology: v5e:2x2
jax: 0.10.0
libtpu: 0.0.40
codegen_flags: <defaults>
</compile_context>

<pallas_src>
import jax
import jax.numpy as jnp
import numpy as np
from jax.experimental import pallas as pl
from jax.experimental.pallas import tpu as pltpu

P_DROP = 0.2
_DROP_SCALE = 1.0 / (1.0 - P_DROP)
_KEEP_THRESHOLD = np.uint32(int(P_DROP * (1 << 32)))   # drop if hash < p * 2^32

# robust across jax versions (older releases named it TPUCompilerParams)
_CompilerParams = getattr(pltpu, "CompilerParams", None) or getattr(
    pltpu, "TPUCompilerParams")


def _round_up(x, m):
    return (x + m - 1) // m * m


def _dropout_keep(gidx_u32, seed_u32):
    """Integer-domain keep mask: murmur3-style finalizer of (global index, seed).

    All constants are numpy scalars -> jaxpr literals (no captured device arrays).
    """
    z = gidx_u32 + seed_u32 * np.uint32(0x9E3779B9)
    z = z ^ (z >> 16)
    z = z * np.uint32(0x85EBCA6B)
    z = z ^ (z >> 13)
    z = z * np.uint32(0xC2B2AE35)
    z = z ^ (z >> 16)
    return z >= _KEEP_THRESHOLD          # keep with probability (1 - P_DROP)


def mlp_kernel(seed_ref, x_ref, w1_ref, b1_ref, w2_ref, b2_ref, o_ref):
    # ---- hidden = relu(x @ W1 + b1): bf16 operands, f32 MXU accumulation ----
    h = jnp.dot(x_ref[...], w1_ref[...], preferred_element_type=jnp.float32)
    h = jnp.maximum(h + b1_ref[...], 0.0)          # b1 is (1, 512) f32, broadcasts

    # ---- dropout(p=0.2): integer hash of the *global* element index ----
    tb, hd = h.shape
    row0 = pl.program_id(0) * tb
    rows = jax.lax.broadcasted_iota(jnp.int32, (tb, hd), 0) + row0
    cols = jax.lax.broadcasted_iota(jnp.int32, (tb, hd), 1)
    gidx = rows.astype(jnp.uint32) * np.uint32(hd) + cols.astype(jnp.uint32)
    keep = _dropout_keep(gidx, seed_ref[0].astype(jnp.uint32))
    h = jnp.where(keep, h, 0.0)            # 1/(1-p) is folded into W2 in the wrapper

    # ---- logits = h @ W2 + b2 ; sigmoid ; round to 4 decimals ----
    logits = jnp.dot(h.astype(jnp.bfloat16), w2_ref[...],
                     preferred_element_type=jnp.float32) + b2_ref[...]
    probs = 1.0 / (1.0 + jnp.exp(-logits))
    o_ref[...] = (jnp.round(probs * 1e4) / 1e4).astype(o_ref.dtype)


def solution_forward(images, params, *, seed=0, block_b=512):
    """images: [B, 784] float32 -> [B, 10] float32."""
    w1, b1, w2, b2 = params                 # (784,512) (1,512) (512,10) (1,10)
    B, K = images.shape
    H = w1.shape[1]
    N = w2.shape[1]
    N_pad = _round_up(N, 128)               # 10 -> 128 (lane-dense output store)

    # Batch tile: multiple of 8 sublanes.  Prefer >= 2 grid steps so v7x's two
    # TensorCores both get work (v5e/v6e are single-TC, extra steps are harmless).
    TB = min(block_b, _round_up(B, 8))
    B_pad = _round_up(B, TB)
    if B_pad // TB < 2 and TB >= 16:
        TB = _round_up((TB + 1) // 2, 8)
        B_pad = _round_up(B, TB)
    grid = (B_pad // TB,)

    # bf16 matmul operands (f32 accumulate in-kernel); biases stay f32.
    # No K-padding of x: block last dim == full array dim (784) is allowed.
    x_p = images.astype(jnp.bfloat16)
    if B_pad != B:
        x_p = jnp.zeros((B_pad, K), jnp.bfloat16).at[:B].set(x_p)
    w1_bf = w1.astype(jnp.bfloat16)
    w2_p = jnp.zeros((H, N_pad), jnp.float32).at[:, :N].set(w2 * _DROP_SCALE)
    w2_bf = w2_p.astype(jnp.bfloat16)
    b2_p = jnp.zeros((1, N_pad), jnp.float32).at[:, :N].set(b2)

    seed_arr = jnp.array([seed], dtype=jnp.int32)

    grid_spec = pltpu.PrefetchScalarGridSpec(
        num_scalar_prefetch=1,              # seed lives in SMEM, prefetched
        grid=grid,
        in_specs=[
            pl.BlockSpec((TB, K), lambda i, s: (i, 0)),       # x tile (pipelined)
            pl.BlockSpec((K, H), lambda i, s: (0, 0)),        # W1 resident
            pl.BlockSpec((1, H), lambda i, s: (0, 0)),        # b1 resident
            pl.BlockSpec((H, N_pad), lambda i, s: (0, 0)),    # W2 resident (pre-scaled)
            pl.BlockSpec((1, N_pad), lambda i, s: (0, 0)),    # b2 resident
        ],
        out_specs=pl.BlockSpec((TB, N_pad), lambda i, s: (i, 0)),
    )

    cost = pl.CostEstimate(
        flops=2 * B_pad * K * H + 2 * B_pad * H * N_pad,
        transcendentals=B_pad * N_pad,
        bytes_accessed=(x_p.size * 2 + w1_bf.size * 2 + w2_bf.size * 2
                        + b1.size * 4 + b2_p.size * 4 + B_pad * N_pad * 4),
    )

    out = pl.pallas_call(
        mlp_kernel,
        out_shape=jax.ShapeDtypeStruct((B_pad, N_pad), jnp.float32),
        grid_spec=grid_spec,
        compiler_params=_CompilerParams(
            dimension_semantics=("parallel",),
            vmem_limit_bytes=32 * 1024 * 1024,
        ),
        cost_estimate=cost,
    )(seed_arr, x_p, w1_bf, b1, w2_bf, b2_p)

    return out[:B, :N]


def reference_forward(images, params, *, seed=0):
    """Pure-JAX reference mirroring the kernel exactly (bf16 matmuls, hash dropout)."""
    w1, b1, w2, b2 = params
    B = images.shape[0]
    H = w1.shape[1]
    h = jnp.dot(images.astype(jnp.bfloat16), w1.astype(jnp.bfloat16),
                preferred_element_type=jnp.float32)
    h = jnp.maximum(h + b1, 0.0)
    rows = jax.lax.broadcasted_iota(jnp.int32, (B, H), 0)
    cols = jax.lax.broadcasted_iota(jnp.int32, (B, H), 1)
    gidx = rows.astype(jnp.uint32) * np.uint32(H) + cols.astype(jnp.uint32)
    keep = _dropout_keep(gidx, np.uint32(seed))
    h = jnp.where(keep, h, 0.0)
    w2s = (w2 * _DROP_SCALE).astype(jnp.bfloat16)
    logits = jnp.dot(h.astype(jnp.bfloat16), w2s,
                     preferred_element_type=jnp.float32) + b2
    probs = 1.0 / (1.0 + jnp.exp(-logits))
    return jnp.round(probs * 1e4) / 1e4


def reference_forward_f32(images, params, *, seed=0):
    """Full-f32 reference (what the torch module computes, modulo the dropout stream)."""
    w1, b1, w2, b2 = params
    B = images.shape[0]
    H = w1.shape[1]
    h = jnp.maximum(images @ w1 + b1, 0.0)
    rows = jax.lax.broadcasted_iota(jnp.int32, (B, H), 0)
    cols = jax.lax.broadcasted_iota(jnp.int32, (B, H), 1)
    gidx = rows.astype(jnp.uint32) * np.uint32(H) + cols.astype(jnp.uint32)
    keep = _dropout_keep(gidx, np.uint32(seed))
    h = jnp.where(keep, h * _DROP_SCALE, 0.0)
    logits = h @ w2 + b2
    probs = 1.0 / (1.0 + jnp.exp(-logits))
    return jnp.round(probs * 1e4) / 1e4


def init_params(key):
    """Deterministic init mimicking nn.Linear's U(-1/sqrt(fan_in), 1/sqrt(fan_in))."""
    k1, k2, k3, k4 = jax.random.split(key, 4)
    bound1 = 1.0 / jnp.sqrt(784.0)
    w1 = jax.random.uniform(k1, (784, 512), jnp.float32, -bound1, bound1)
    b1 = jax.random.uniform(k2, (1, 512), jnp.float32, -bound1, bound1)
    bound2 = 1.0 / jnp.sqrt(512.0)
    w2 = jax.random.uniform(k3, (512, 10), jnp.float32, -bound2, bound2)
    b2 = jax.random.uniform(k4, (1, 10), jnp.float32, -bound2, bound2)
    return w1, b1, w2, b2


if __name__ == "__main__":
    key = jax.random.PRNGKey(0)
    pkey, xkey = jax.random.split(key)
    params = init_params(pkey)

    B = 8  # small batch, sublane-aligned
    images = jax.random.normal(xkey, (B, 784), dtype=jnp.float32)

    out = jax.block_until_ready(solution_forward(images, params, seed=0))

    assert out.shape == (B, 10) and out.dtype == jnp.float32
    assert bool(jnp.all(jnp.isfinite(out)))
    assert bool(jnp.all((out >= 0.0) & (out <= 1.0)))

    ref = reference_forward(images, params, seed=0)
    assert bool(jnp.max(jnp.abs(out - ref)) < 1e-3), "mismatch vs bf16 reference"

    ref32 = reference_forward_f32(images, params, seed=0)
    assert bool(jnp.max(jnp.abs(out - ref32)) < 2e-2), "mismatch vs f32 reference"

    print("KERNEL_OK")
</pallas_src>

<mosaic_0001>
module attributes {stable_mosaic.version = 11 : i64} {
  func.func @mlp_kernel(%arg0: i32, %arg1: memref<1xi32, #tpu.memory_space<smem>>, %arg2: memref<8x784xbf16, #tpu.memory_space<vmem>>, %arg3: memref<784x512xbf16, #tpu.memory_space<vmem>>, %arg4: memref<1x512xf32, #tpu.memory_space<vmem>>, %arg5: memref<512x128xbf16, #tpu.memory_space<vmem>>, %arg6: memref<1x128xf32, #tpu.memory_space<vmem>>, %arg7: memref<8x128xf32, #tpu.memory_space<vmem>>) attributes {dimension_semantics = [#tpu.dimension_semantics<parallel>], iteration_bounds = array<i64: 1>, scalar_prefetch = 1 : i64, scratch_operands = 0 : i64, tpu.core_type = #tpu.core_type<tc>, window_params = [{transform_indices = @transform_0, window_bounds = array<i64: 8, 784>}, {pipeline_mode = #tpu.pipeline_mode<synchronous>, transform_indices = @transform_1, window_bounds = array<i64: 784, 512>}, {pipeline_mode = #tpu.pipeline_mode<synchronous>, transform_indices = @transform_2, window_bounds = array<i64: 1, 512>}, {pipeline_mode = #tpu.pipeline_mode<synchronous>, transform_indices = @transform_3, window_bounds = array<i64: 512, 128>}, {pipeline_mode = #tpu.pipeline_mode<synchronous>, transform_indices = @transform_4, window_bounds = array<i64: 1, 128>}, {transform_indices = @transform_5, window_bounds = array<i64: 8, 128>}]} {
    %c0 = arith.constant 0 : index
    %c0_0 = arith.constant 0 : index
    %0 = vector.load %arg2[%c0, %c0_0] : memref<8x784xbf16, #tpu.memory_space<vmem>>, vector<8x784xbf16>
    %c0_1 = arith.constant 0 : index
    %c0_2 = arith.constant 0 : index
    %1 = vector.load %arg3[%c0_1, %c0_2] : memref<784x512xbf16, #tpu.memory_space<vmem>>, vector<784x512xbf16>
    %cst = arith.constant dense<0.000000e+00> : vector<8x512xf32>
    %2 = tpu.matmul %0, %1, %cst {dimension_numbers = #tpu.dot_dimension_numbers<[1], [0], [0], [1], [0, 0, 1, 1], [], []>} : vector<8x784xbf16>, vector<784x512xbf16>, vector<8x512xf32> -> vector<8x512xf32>
    %c0_3 = arith.constant 0 : index
    %c0_4 = arith.constant 0 : index
    %3 = vector.load %arg4[%c0_3, %c0_4] : memref<1x512xf32, #tpu.memory_space<vmem>>, vector<1x512xf32>
    %4 = vector.broadcast %3 : vector<1x512xf32> to vector<8x512xf32>
    %5 = arith.addf %2, %4 : vector<8x512xf32>
    %cst_5 = arith.constant 0.000000e+00 : f32
    %6 = vector.broadcast %cst_5 : f32 to vector<8x512xf32>
    %7 = arith.maximumf %5, %6 : vector<8x512xf32>
    %c8_i32 = arith.constant 8 : i32
    %8 = arith.muli %arg0, %c8_i32 : i32
    %9 = tpu.iota {dimensions = array<i32: 0>} : vector<8x512xi32>
    %10 = vector.broadcast %8 : i32 to vector<8x512xi32>
    %11 = arith.addi %9, %10 : vector<8x512xi32>
    %12 = tpu.iota {dimensions = array<i32: 1>} : vector<8x512xi32>
    %c512_i32 = arith.constant 512 : i32
    %13 = vector.broadcast %c512_i32 : i32 to vector<8x512xi32>
    %14 = arith.muli %11, %13 : vector<8x512xi32>
    %15 = arith.addi %14, %12 : vector<8x512xi32>
    %c0_6 = arith.constant 0 : index
    %16 = memref.load %arg1[%c0_6] : memref<1xi32, #tpu.memory_space<smem>>
    %c-1640531527_i32 = arith.constant -1640531527 : i32
    %17 = arith.muli %16, %c-1640531527_i32 : i32
    %18 = vector.broadcast %17 : i32 to vector<8x512xi32>
    %19 = arith.addi %15, %18 : vector<8x512xi32>
    %c16_i32 = arith.constant 16 : i32
    %20 = vector.broadcast %c16_i32 : i32 to vector<8x512xi32>
    %21 = arith.shrui %19, %20 : vector<8x512xi32>
    %22 = arith.xori %19, %21 : vector<8x512xi32>
    %c-2048144789_i32 = arith.constant -2048144789 : i32
    %23 = vector.broadcast %c-2048144789_i32 : i32 to vector<8x512xi32>
    %24 = arith.muli %22, %23 : vector<8x512xi32>
    %c13_i32 = arith.constant 13 : i32
    %25 = vector.broadcast %c13_i32 : i32 to vector<8x512xi32>
    %26 = arith.shrui %24, %25 : vector<8x512xi32>
    %27 = arith.xori %24, %26 : vector<8x512xi32>
    %c-1028477387_i32 = arith.constant -1028477387 : i32
    %28 = vector.broadcast %c-1028477387_i32 : i32 to vector<8x512xi32>
    %29 = arith.muli %27, %28 : vector<8x512xi32>
    %c16_i32_7 = arith.constant 16 : i32
    %30 = vector.broadcast %c16_i32_7 : i32 to vector<8x512xi32>
    %31 = arith.shrui %29, %30 : vector<8x512xi32>
    %32 = arith.xori %29, %31 : vector<8x512xi32>
    %c858993459_i32 = arith.constant 858993459 : i32
    %33 = vector.broadcast %c858993459_i32 : i32 to vector<8x512xi32>
    %34 = arith.cmpi uge, %32, %33 : vector<8x512xi32>
    %cst_8 = arith.constant 0.000000e+00 : f32
    %35 = vector.broadcast %cst_8 : f32 to vector<8x512xf32>
    %36 = arith.select %34, %7, %35 : vector<8x512xi1>, vector<8x512xf32>
    %37 = arith.truncf %36 : vector<8x512xf32> to vector<8x512xbf16>
    %c0_9 = arith.constant 0 : index
    %c0_10 = arith.constant 0 : index
    %38 = vector.load %arg5[%c0_9, %c0_10] : memref<512x128xbf16, #tpu.memory_space<vmem>>, vector<512x128xbf16>
    %cst_11 = arith.constant dense<0.000000e+00> : vector<8x128xf32>
    %39 = tpu.matmul %37, %38, %cst_11 {dimension_numbers = #tpu.dot_dimension_numbers<[1], [0], [0], [1], [0, 0, 1, 1], [], []>} : vector<8x512xbf16>, vector<512x128xbf16>, vector<8x128xf32> -> vector<8x128xf32>
    %c0_12 = arith.constant 0 : index
    %c0_13 = arith.constant 0 : index
    %40 = vector.load %arg6[%c0_12, %c0_13] : memref<1x128xf32, #tpu.memory_space<vmem>>, vector<1x128xf32>
    %41 = vector.broadcast %40 : vector<1x128xf32> to vector<8x128xf32>
    %42 = arith.addf %39, %41 : vector<8x128xf32>
    %cst_14 = arith.constant 0.000000e+00 : f32
    %43 = vector.broadcast %cst_14 : f32 to vector<8x128xf32>
    %44 = arith.subf %43, %42 : vector<8x128xf32>
    %45 = math.exp %44 : vector<8x128xf32>
    %cst_15 = arith.constant 1.000000e+00 : f32
    %46 = vector.broadcast %cst_15 : f32 to vector<8x128xf32>
    %47 = arith.addf %46, %45 : vector<8x128xf32>
    %cst_16 = arith.constant 1.000000e+00 : f32
    %48 = vector.broadcast %cst_16 : f32 to vector<8x128xf32>
    %49 = arith.divf %48, %47 : vector<8x128xf32>
    %cst_17 = arith.constant 1.000000e+04 : f32
    %50 = vector.broadcast %cst_17 : f32 to vector<8x128xf32>
    %51 = arith.mulf %49, %50 : vector<8x128xf32>
    %52 = math.roundeven %51 : vector<8x128xf32>
    %cst_18 = arith.constant 1.000000e+04 : f32
    %53 = vector.broadcast %cst_18 : f32 to vector<8x128xf32>
    %54 = arith.divf %52, %53 : vector<8x128xf32>
    %c0_19 = arith.constant 0 : index
    %c0_20 = arith.constant 0 : index
    %55 = vector.load %arg7[%c0_19, %c0_20] : memref<8x128xf32, #tpu.memory_space<vmem>>, vector<8x128xf32>
    tpu.vector_store %arg7[%c0_19, %c0_20], %54 {strides = array<i32>} : memref<8x128xf32, #tpu.memory_space<vmem>>, vector<8x128xf32>,
    return
  }
  func.func @transform_0(%arg0: i32, %arg1: memref<1xi32, #tpu.memory_space<smem>>) -> (i32, i32) {
    %c0_i32 = arith.constant 0 : i32
    %c0_i32_0 = arith.constant 0 : i32
    return %arg0, %c0_i32 : i32, i32
  }
  func.func @transform_1(%arg0: i32, %arg1: memref<1xi32, #tpu.memory_space<smem>>) -> (i32, i32) {
    %c0_i32 = arith.constant 0 : i32
    %c0_i32_0 = arith.constant 0 : i32
    %c0_i32_1 = arith.constant 0 : i32
    return %c0_i32, %c0_i32_0 : i32, i32
  }
  func.func @transform_2(%arg0: i32, %arg1: memref<1xi32, #tpu.memory_space<smem>>) -> (i32, i32) {
    %c0_i32 = arith.constant 0 : i32
    %c0_i32_0 = arith.constant 0 : i32
    %c0_i32_1 = arith.constant 0 : i32
    return %c0_i32, %c0_i32_0 : i32, i32
  }
  func.func @transform_3(%arg0: i32, %arg1: memref<1xi32, #tpu.memory_space<smem>>) -> (i32, i32) {
    %c0_i32 = arith.constant 0 : i32
    %c0_i32_0 = arith.constant 0 : i32
    %c0_i32_1 = arith.constant 0 : i32
    return %c0_i32, %c0_i32_0 : i32, i32
  }
  func.func @transform_4(%arg0: i32, %arg1: memref<1xi32, #tpu.memory_space<smem>>) -> (i32, i32) {
    %c0_i32 = arith.constant 0 : i32
    %c0_i32_0 = arith.constant 0 : i32
    %c0_i32_1 = arith.constant 0 : i32
    return %c0_i32, %c0_i32_0 : i32, i32
  }
  func.func @transform_5(%arg0: i32, %arg1: memref<1xi32, #tpu.memory_space<smem>>) -> (i32, i32) {
    %c0_i32 = arith.constant 0 : i32
    %c0_i32_0 = arith.constant 0 : i32
    return %arg0, %c0_i32 : i32, i32
  }
}

</mosaic_0001>

<bundles_post_ra>
// kernel: tpu_custom_call.1
= control target key start
LH: loop header
LB: loop body
LE: loop exit
PB: predicated region body
PF: predicated region fallthrough
CT: control target
= control target key end

     0   :  { %12 = vsyncpa [#allocation5], 0  ;;  %s3565_s0 = inlined_call_operand.<no memory space> [shape: s32[1], index: 0, kind: input, shape index: {}]   ;;  %s3566_s1 = inlined_call_operand.hbm [shape: bf16[8,784], index: 1, kind: input, shape index: {}]   ;;  %s3567_s2 = inlined_call_operand.hbm [shape: bf16[784,512], index: 2, kind: input, shape index: {}]   ;;  %s3568_s3 = inlined_call_operand.hbm [shape: f32[1,512], index: 3, kind: input, shape index: {}]   ;;  %s3569_s4 = inlined_call_operand.hbm [shape: bf16[512,128], index: 4, kind: input, shape index: {}]   ;;  %s3570_s5 = inlined_call_operand.vmem [shape: f32[1,128], index: 5, kind: input, shape index: {}]   ;;  %s3571_s6 = inlined_call_operand.hbm [shape: f32[8,128], index: 6, kind: output, shape index: {}]  }
   0x1   :  { %13 = vsyncpa [#allocation8], 0 }
   0x2   :  { %14 = vsyncpa [#allocation11], 0  ;;  %s31_s23 = sshll.u32 %s3567_s2, 4  ;;  %s32_s23 = int_to_ptr.hbm [resolvable:$true] %s31_s23 }
   0x3   :  { %15 = vsyncpa [#allocation6], 0  ;;  %s3417_s24 = smov [#allocation7]   ;;  %s21_s28 = sshll.u32 %s3566_s1, 4  ;;  %s22_s28 = int_to_ptr.hbm [resolvable:$true] %s21_s28 }
   0x4   :  { %s33_s25 = sshll.u32 %s3417_s24, 4  ;;  %s3418_s29 = smov 256   ;;  %s34_s25 = int_to_ptr.vmem [resolvable:$true] %s33_s25 }
   0x5   :  { %s3419_s30 = smov 16   ;;  %s3420_s7 = smov [#allocation4]  }
   0x6   :  { %39 = dma.hbm_to_vmem [thread:$0]  %s32_s23, 25088, %s34_s25, [#allocation8], %s3418_s29, %s3418_s29, %s3419_s30  }
   0x7   :  { %s23_s8 = sshll.u32 %s3420_s7, 4  ;;  %s45_s11 = sshll.u32 %s3568_s3, 4  ;;  %s24_s8 = int_to_ptr.vmem [resolvable:$true] %s23_s8  ;;  %s46_s11 = int_to_ptr.hbm [resolvable:$true] %s45_s11 }
   0x8   :  { %26 = dma.hbm_to_vmem [thread:$0]  %s22_s28, 448, %s24_s8, [#allocation5]  }
   0x9   :  { %s55_s13 = sshll.u32 %s3569_s4, 4  ;;  %s3421_s14 = smov [#allocation9]   ;;  %s56_s13 = int_to_ptr.hbm [resolvable:$true] %s55_s13 }
   0xa   :  { %s47_s15 = sshll.u32 %s3421_s14, 4  ;;  %s3422_s1 = smov [#allocation10]   ;;  %s48_s15 = int_to_ptr.vmem [resolvable:$true] %s47_s15 }
   0xb   :  { %50 = dma.hbm_to_vmem [thread:$0]  %s46_s11, 64, %s48_s15, [#allocation8]  }
   0xc   :  { %s57_s16 = sshll.u32 %s3422_s1, 4  ;;  %s3423_s17 = smov 64   ;;  %s58_s16 = int_to_ptr.vmem [resolvable:$true] %s57_s16 }
   0xd   :  { %s3424_s18 = smov 4  }
   0xe   :  { %63 = dma.hbm_to_vmem [thread:$0]  %s56_s13, 4096, %s58_s16, [#allocation11], %s3423_s17, %s3423_s17, %s3424_s18  }
   0xf   :  { %3409 = dma.done.wait [#allocation5], 448  }
  0x10   :  { %3410 = vsyncadd [#allocation5], 4294966848 }
  0x11   :  { %3411 = dma.done.wait [#allocation8], 25152  }
  0x12   :  { %3412 = vsyncadd [#allocation8], 4294942144 }
  0x13   :  { %3413 = dma.done.wait [#allocation11], 4096  }
  0x14   :  { %3414 = vsyncadd [#allocation11], 4294963200  ;;  %v2218_v0 = vld [vmem:[#allocation7 + $0xe0] sm:$0xf]  ;;  %v3066_v1 = vld [vmem:[#allocation7 + $0xec] sm:$0xf0] }
  0x15   :  { %v2346_v2 = vld [vmem:[#allocation7 + $0x1e0] sm:$0xf]  ;;  %v2219_v3 = vor.u32 %v3066_v1, %v2218_v0  ;;  %v3098_v4 = vld [vmem:[#allocation7 + $0x1ec] sm:$0xf0]  ;;  %vm1297_vm0 = vcmask 130048   ;;  %s2092_s24 = sshll.u32 %s3571_s6, 4  ;;  %s2093_s24 = int_to_ptr.hbm [resolvable:$true] %s2092_s24 }
  0x16   :  { %v2474_v5 = vld [vmem:[#allocation7 + $0x2e0] sm:$0xf]  ;;  %v3130_v6 = vld [vmem:[#allocation7 + $0x2ec] sm:$0xf0]  ;;  %v2347_v7 = vor.u32 %v3098_v4, %v2346_v2  ;;  %s1685_s19 = smul.u32 2654435769, %s3565_s0 }
  0x17   :  { %v2475_v8 = vor.u32 %v3130_v6, %v2474_v5  ;;  %v2602_v9 = vld [vmem:[#allocation7 + $0x3e0] sm:$0xf]  ;;  %v3162_v10 = vld [vmem:[#allocation7 + $0x3ec] sm:$0xf0]  ;;  %1301 = vmatpush.bf16.msra.mxu0 %v2219_v3 }
  0x18   :  { %v2202_v11 = vld [vmem:[#allocation7 + $0xc0] sm:$0xf]  ;;  %v2603_v12 = vor.u32 %v3162_v10, %v2602_v9  ;;  %v3062_v13 = vld [vmem:[#allocation7 + $0xcc] sm:$0xf0]  ;;  %1314 = vmatpush.bf16.msra.mxu1 %v2347_v7 }
  0x19   :  { %v2330_v14 = vld [vmem:[#allocation7 + $0x1c0] sm:$0xf]  ;;  %v3094_v15 = vld [vmem:[#allocation7 + $0x1cc] sm:$0xf0]  ;;  %1327 = vmatpush.bf16.msra.mxu2 %v2475_v8  ;;  %v2203_v16 = vor.u32 %v3062_v13, %v2202_v11 }
  0x1a   :  { %v2331_v17 = vor.u32 %v3094_v15, %v2330_v14  ;;  %v2458_v18 = vld [vmem:[#allocation7 + $0x2c0] sm:$0xf]  ;;  %v3126_v19 = vld [vmem:[#allocation7 + $0x2cc] sm:$0xf0]  ;;  %1340 = vmatpush.bf16.msra.mxu3 %v2603_v12 }
  0x1b   :  { %v2586_v20 = vld [vmem:[#allocation7 + $0x3c0] sm:$0xf]  ;;  %v2459_v21 = vor.u32 %v3126_v19, %v2458_v18  ;;  %v3158_v22 = vld [vmem:[#allocation7 + $0x3cc] sm:$0xf0]  ;;  %1302 = vmatpush.bf16.msra.mxu0 %v2203_v16 }
  0x1c   :  { %v2186_v23 = vld [vmem:[#allocation7 + $0xa0] sm:$0xf]  ;;  %v3058_v24 = vld [vmem:[#allocation7 + $0xac] sm:$0xf0]  ;;  %v2587_v25 = vor.u32 %v3158_v22, %v2586_v20  ;;  %1315 = vmatpush.bf16.msra.mxu1 %v2331_v17 }
  0x1d   :  { %v2314_v26 = vld [vmem:[#allocation7 + $0x1a0] sm:$0xf]  ;;  %v3090_v27 = vld [vmem:[#allocation7 + $0x1ac] sm:$0xf0]  ;;  %v2187_v29 = vor.u32 %v3058_v24, %v2186_v23  ;;  %1328 = vmatpush.bf16.msra.mxu2 %v2459_v21 }
  0x1e   :  { %v2442_v28 = vld [vmem:[#allocation7 + $0x2a0] sm:$0xf]  ;;  %v3122_v30 = vld [vmem:[#allocation7 + $0x2ac] sm:$0xf0]  ;;  %v2315_v33 = vor.u32 %v3090_v27, %v2314_v26  ;;  %1341 = vmatpush.bf16.msra.mxu3 %v2587_v25 }
  0x1f   :  { %v2570_v31 = vld [vmem:[#allocation7 + $0x3a0] sm:$0xf]  ;;  %v3154_v32 = vld [vmem:[#allocation7 + $0x3ac] sm:$0xf0]  ;;  %v2443_v34 = vor.u32 %v3122_v30, %v2442_v28  ;;  %1303 = vmatpush.bf16.msra.mxu0 %v2187_v29 }
  0x20   :  { %v2170_v35 = vld [vmem:[#allocation7 + $0x80] sm:$0xf]  ;;  %v3054_v36 = vld [vmem:[#allocation7 + $0x8c] sm:$0xf0]  ;;  %v2571_v38 = vor.u32 %v3154_v32, %v2570_v31  ;;  %1316 = vmatpush.bf16.msra.mxu1 %v2315_v33 }
  0x21   :  { %v2298_v37 = vld [vmem:[#allocation7 + $0x180] sm:$0xf]  ;;  %v3086_v39 = vld [vmem:[#allocation7 + $0x18c] sm:$0xf0]  ;;  %v2171_v44 = vor.u32 %v3054_v36, %v2170_v35  ;;  %1329 = vmatpush.bf16.msra.mxu2 %v2443_v34  ;;  %v3064_v34 = vld [vmem:[#allocation7 + $0xe4] sm:$0xf] }
  0x22   :  { %v2426_v40 = vld [vmem:[#allocation7 + $0x280] sm:$0xf]  ;;  %v3118_v41 = vld [vmem:[#allocation7 + $0x28c] sm:$0xf0]  ;;  %v2299_v45 = vor.u32 %v3086_v39, %v2298_v37  ;;  %1342 = vmatpush.bf16.msra.mxu3 %v2571_v38  ;;  %v2220_v35 = vld [vmem:[#allocation7 + $0xf0] sm:$0xf0] }
  0x23   :  { %v2554_v42 = vld [vmem:[#allocation7 + $0x380] sm:$0xf]  ;;  %v3150_v43 = vld [vmem:[#allocation7 + $0x38c] sm:$0xf0]  ;;  %v2427_v46 = vor.u32 %v3118_v41, %v2426_v40  ;;  %1304 = vmatpush.bf16.msra.mxu0 %v2171_v44  ;;  %v83_v37 = vld [vmem:[#allocation4] sm:$0xff] }
  0x24   :  { %v2154_v47 = vld [vmem:[#allocation7 + $0x60] sm:$0xf]  ;;  %v3050_v48 = vld [vmem:[#allocation7 + $0x6c] sm:$0xf0]  ;;  %v2555_v50 = vor.u32 %v3150_v43, %v2554_v42  ;;  %1317 = vmatpush.bf16.msra.mxu1 %v2299_v45  ;;  %v297_v41 = vunpack.c.l.b16 %v83_v37 }
  0x25   :  { %v2282_v49 = vld [vmem:[#allocation7 + $0x160] sm:$0xf]  ;;  %v3082_v51 = vld [vmem:[#allocation7 + $0x16c] sm:$0xf0]  ;;  %v2155_v56 = vor.u32 %v3050_v48, %v2154_v47  ;;  %1330 = vmatpush.bf16.msra.mxu2 %v2427_v46  ;;  %v3096_v46 = vld [vmem:[#allocation7 + $0x1e4] sm:$0xf] }
  0x26   :  { %v2410_v52 = vld [vmem:[#allocation7 + $0x260] sm:$0xf]  ;;  %v3114_v53 = vld [vmem:[#allocation7 + $0x26c] sm:$0xf0]  ;;  %v2283_v57 = vor.u32 %v3082_v51, %v2282_v49  ;;  %1343 = vmatpush.bf16.msra.mxu3 %v2555_v50  ;;  %v2348_v47 = vld [vmem:[#allocation7 + $0x1f0] sm:$0xf0]  ;;  %v2223_v49 = vor.u32 %v3064_v34, %v2220_v35 }
  0x27   :  { %v2538_v54 = vld [vmem:[#allocation7 + $0x360] sm:$0xf]  ;;  %v3146_v55 = vld [vmem:[#allocation7 + $0x36c] sm:$0xf0]  ;;  %v2411_v58 = vor.u32 %v3114_v53, %v2410_v52  ;;  %1305 = vmatpush.bf16.msra.mxu0 %v2155_v56  ;;  %v2204_v56 = vld [vmem:[#allocation7 + $0xd0] sm:$0xf0] }
  0x28   :  { %v2138_v59 = vld [vmem:[#allocation7 + $0x40] sm:$0xf]  ;;  %v3046_v60 = vld [vmem:[#allocation7 + $0x4c] sm:$0xf0]  ;;  %v2539_v62 = vor.u32 %v3146_v55, %v2538_v54  ;;  %1318 = vmatpush.bf16.msra.mxu1 %v2283_v57  ;;  %v3060_v55 = vld [vmem:[#allocation7 + $0xc4] sm:$0xf]  ;;  %v3476_v57 = vpack.c.b16 %v297_v41, %v297_v41 }
  0x29   :  { %v2266_v61 = vld [vmem:[#allocation7 + $0x140] sm:$0xf]  ;;  %v3078_v63 = vld [vmem:[#allocation7 + $0x14c] sm:$0xf0]  ;;  %v2139_v4 = vor.u32 %v3046_v60, %v2138_v59  ;;  %1331 = vmatpush.bf16.msra.mxu2 %v2411_v58  ;;  %v298_v58 = vunpack.c.h.b16 %v83_v37  ;;  %v2156_v34 = vld [vmem:[#allocation7 + $0x70] sm:$0xf0] }
  0x2a   :  { %v2394_v0 = vld [vmem:[#allocation7 + $0x240] sm:$0xf]  ;;  %v3110_v1 = vld [vmem:[#allocation7 + $0x24c] sm:$0xf0]  ;;  %v2267_v5 = vor.u32 %v3078_v63, %v2266_v61  ;;  %1344 = vmatpush.bf16.msra.mxu3 %v2539_v62  ;;  %v2351_v61 = vor.u32 %v3096_v46, %v2348_v47  ;;  %v3092_v63 = vld [vmem:[#allocation7 + $0x1c4] sm:$0xf] }
  0x2b   :  { %v2522_v2 = vld [vmem:[#allocation7 + $0x340] sm:$0xf]  ;;  %v3142_v3 = vld [vmem:[#allocation7 + $0x34c] sm:$0xf0]  ;;  %v2395_v6 = vor.u32 %v3110_v1, %v2394_v0  ;;  %1306 = vmatpush.bf16.msra.mxu0 %v2139_v4  ;;  %v2332_v0 = vld [vmem:[#allocation7 + $0x1d0] sm:$0xf0] }
  0x2c   :  { %v2122_v7 = vld [vmem:[#allocation7 + $0x20] sm:$0xf]  ;;  %v3042_v8 = vld [vmem:[#allocation7 + $0x2c] sm:$0xf0]  ;;  %v2523_v10 = vor.u32 %v3142_v3, %v2522_v2  ;;  %1319 = vmatpush.bf16.msra.mxu1 %v2267_v5  ;;  %v2207_v2 = vor.u32 %v3060_v55, %v2204_v56  ;;  %v3044_v46 = vld [vmem:[#allocation7 + $0x44] sm:$0xf] }
  0x2d   :  { %v2250_v9 = vld [vmem:[#allocation7 + $0x120] sm:$0xf]  ;;  %v3074_v11 = vld [vmem:[#allocation7 + $0x12c] sm:$0xf0]  ;;  %v2123_v17 = vor.u32 %v3042_v8, %v2122_v7  ;;  %1332 = vmatpush.bf16.msra.mxu2 %v2395_v6  ;;  %v3056_v7 = vld [vmem:[#allocation7 + $0xa4] sm:$0xf] }
  0x2e   :  { %v2378_v12 = vld [vmem:[#allocation7 + $0x220] sm:$0xf]  ;;  %v3106_v13 = vld [vmem:[#allocation7 + $0x22c] sm:$0xf0]  ;;  %v2251_v21 = vor.u32 %v3074_v11, %v2250_v9  ;;  %1345 = vmatpush.bf16.msra.mxu3 %v2523_v10  ;;  %v2188_v8 = vld [vmem:[#allocation7 + $0xb0] sm:$0xf0]  ;;  %v3482_v9 = vpack.c.b16 %v298_v58, %v298_v58  ;;  %v2335_v10 = vor.u32 %v3092_v63, %v2332_v0 }
  0x2f   :  { %v2506_v14 = vld [vmem:[#allocation7 + $0x320] sm:$0xf]  ;;  %v3138_v15 = vld [vmem:[#allocation7 + $0x32c] sm:$0xf0]  ;;  %v2379_v22 = vor.u32 %v3106_v13, %v2378_v12  ;;  %1307 = vmatpush.bf16.msra.mxu0 %v2123_v17  ;;  %v3088_v12 = vld [vmem:[#allocation7 + $0x1a4] sm:$0xf] }
  0x30   :  { %v2106_v16 = vld [vmem:[#allocation7] sm:$0xf]  ;;  %v3038_v18 = vld [vmem:[#allocation7 + $0xc] sm:$0xf0]  ;;  %v2507_v26 = vor.u32 %v3138_v15, %v2506_v14  ;;  %1320 = vmatpush.bf16.msra.mxu1 %v2251_v21  ;;  %v2316_v13 = vld [vmem:[#allocation7 + $0x1b0] sm:$0xf0]  ;;  %v2191_v15 = vor.u32 %v3056_v7, %v2188_v8 }
  0x31   :  { %v2234_v19 = vld [vmem:[#allocation7 + $0x100] sm:$0xf]  ;;  %v3070_v20 = vld [vmem:[#allocation7 + $0x10c] sm:$0xf0]  ;;  %v2107_v33 = vor.u32 %v3038_v18, %v2106_v16  ;;  %1333 = vmatpush.bf16.msra.mxu2 %v2379_v22  ;;  %v2172_v21 = vld [vmem:[#allocation7 + $0x90] sm:$0xf0] }
  0x32   :  { %v2362_v23 = vld [vmem:[#allocation7 + $0x200] sm:$0xf]  ;;  %v3102_v24 = vld [vmem:[#allocation7 + $0x20c] sm:$0xf0]  ;;  %v2235_v38 = vor.u32 %v3070_v20, %v2234_v19  ;;  %1346 = vmatpush.bf16.msra.mxu3 %v2507_v26  ;;  %v3052_v20 = vld [vmem:[#allocation7 + $0x84] sm:$0xf] }
  0x33   :  { %v84_v25 = vld [vmem:[#allocation4 + $0x8] sm:$0xff]  ;;  %v2490_v27 = vld [vmem:[#allocation7 + $0x300] sm:$0xf]  ;;  %v2363_v39 = vor.u32 %v3102_v24, %v2362_v23  ;;  %1308 = vmatpush.bf16.msra.mxu0 %v2107_v33  ;;  %v86_v22 = vld [vmem:[#allocation4 + $0x18] sm:$0xf]  ;;  %v2319_v23 = vor.u32 %v3088_v12, %v2316_v13 }
  0x34   :  { %v3134_v28 = vld [vmem:[#allocation7 + $0x30c] sm:$0xf0]  ;;  %v2730_v29 = vld [vmem:[#allocation7 + $0x4e0] sm:$0xf]  ;;  %v299_v36 = vunpack.c.l.b16 %v84_v25  ;;  %v300_v42 = vunpack.c.h.b16 %v84_v25  ;;  %1321 = vmatpush.bf16.msra.mxu1 %v2235_v38  ;;  %v3084_v25 = vld [vmem:[#allocation7 + $0x184] sm:$0xf]  ;;  %v303_v35 = vunpack.c.l.b16 %v86_v22 }
  0x35   :  { %v3194_v30 = vld [vmem:[#allocation7 + $0x4ec] sm:$0xf0]  ;;  %v2858_v31 = vld [vmem:[#allocation7 + $0x5e0] sm:$0xf]  ;;  %v2491_v43 = vor.u32 %v3134_v28, %v2490_v27  ;;  %1334 = vmatpush.bf16.msra.mxu2 %v2363_v39  ;;  %v2300_v26 = vld [vmem:[#allocation7 + $0x190] sm:$0xf0]  ;;  %v2175_v28 = vor.u32 %v3052_v20, %v2172_v21 }
  0x36   :  { %v3226_v32 = vld [vmem:[#allocation7 + $0x5ec] sm:$0xf0]  ;;  %v2874_v40 = vld [vmem:[#allocation7 + $0x600] sm:$0xf]  ;;  %v2731_v44 = vor.u32 %v3194_v30, %v2730_v29  ;;  %v3474_v53 = vpack.c.b16 %v299_v36, %v299_v36  ;;  %v3478_v60 = vpack.c.b16 %v300_v42, %v300_v42  ;;  %1309 = vmatmul.bf16.vlgmr.msra.gmra.mxu0 %v3476_v57  ;;  %v3048_v33 = vld [vmem:[#allocation7 + $0x64] sm:$0xf]  ;;  %v2303_v36 = vor.u32 %v3084_v25, %v2300_v26 }
  0x37   :  { %v3230_v45 = vld [vmem:[#allocation7 + $0x60c] sm:$0xf0]  ;;  %v2859_v48 = vor.u32 %v3226_v32, %v2858_v31  ;;  %v2714_v50 = vld [vmem:[#allocation7 + $0x4c0] sm:$0xf]  ;;  %1347 = vmatpush.bf16.msra.mxu3 %v2491_v43  ;;  %1322 = vmatmul.bf16.vlgmr.msra.gmra.mxu1 %v3482_v9  ;;  %v3080_v38 = vld [vmem:[#allocation7 + $0x164] sm:$0xf]  ;;  %v2159_v41 = vor.u32 %v3048_v33, %v2156_v34 }
  0x38   :  { %v3190_v51 = vld [vmem:[#allocation7 + $0x4cc] sm:$0xf0]  ;;  %v2842_v52 = vld [vmem:[#allocation7 + $0x5c0] sm:$0xf]  ;;  %v2875_v59 = vor.u32 %v3230_v45, %v2874_v40  ;;  %1353 = vmatpush.bf16.msrb.mxu0 %v2731_v44  ;;  %1335 = vmatmul.bf16.vlgmr.msra.gmra.mxu2 %v3474_v53  ;;  %v2284_v39 = vld [vmem:[#allocation7 + $0x170] sm:$0xf0] }
  0x39   :  { %v3222_v54 = vld [vmem:[#allocation7 + $0x5cc] sm:$0xf0]  ;;  %v2715_v62 = vor.u32 %v3190_v51, %v2714_v50  ;;  %1366 = vmatpush.bf16.msrb.mxu1 %v2859_v48  ;;  %v2698_v3 = vld [vmem:[#allocation7 + $0x4a0] sm:$0xf]  ;;  %v2140_v47 = vld [vmem:[#allocation7 + $0x50] sm:$0xf0]  ;;  %v3486_v48 = vpack.c.b16 %v303_v35, %v303_v35 }
  0x3a   :  { %v2843_v1 = vor.u32 %v3222_v54, %v2842_v52  ;;  %v3186_v4 = vld [vmem:[#allocation7 + $0x4ac] sm:$0xf0]  ;;  %v2826_v5 = vld [vmem:[#allocation7 + $0x5a0] sm:$0xf]  ;;  %1386 = vmatpush.bf16.msrb.mxu2 %v2875_v59  ;;  %1348 = vmatmul.bf16.vlgmr.msra.gmra.mxu3 %v3478_v60  ;;  %v3076_v51 = vld [vmem:[#allocation7 + $0x144] sm:$0xf]  ;;  %v2143_v55 = vor.u32 %v3044_v46, %v2140_v47 }
  0x3b   :  { %1392 = vmatpush.bf16.msrb.mxu3 %v2223_v49  ;;  %v3218_v6 = vld [vmem:[#allocation7 + $0x5ac] sm:$0xf0]  ;;  %v2699_v11 = vor.u32 %v3186_v4, %v2698_v3  ;;  %v2682_v16 = vld [vmem:[#allocation7 + $0x480] sm:$0xf]  ;;  %v2287_v49 = vor.u32 %v3080_v38, %v2284_v39  ;;  %v2268_v52 = vld [vmem:[#allocation7 + $0x150] sm:$0xf0] }
  0x3c   :  { %1354 = vmatpush.bf16.msrb.mxu0 %v2715_v62  ;;  %v2827_v14 = vor.u32 %v3218_v6, %v2826_v5  ;;  %v3182_v17 = vld [vmem:[#allocation7 + $0x48c] sm:$0xf0]  ;;  %v2810_v18 = vld [vmem:[#allocation7 + $0x580] sm:$0xf]  ;;  %v3040_v62 = vld [vmem:[#allocation7 + $0x24] sm:$0xf] }
  0x3d   :  { %1367 = vmatpush.bf16.msrb.mxu1 %v2843_v1  ;;  %v3214_v19 = vld [vmem:[#allocation7 + $0x58c] sm:$0xf0]  ;;  %v2683_v24 = vor.u32 %v3182_v17, %v2682_v16  ;;  %v2666_v29 = vld [vmem:[#allocation7 + $0x460] sm:$0xf]  ;;  %v2124_v63 = vld [vmem:[#allocation7 + $0x30] sm:$0xf0]  ;;  %v2271_v1 = vor.u32 %v3076_v51, %v2268_v52 }
  0x3e   :  { %1405 = vmatpush.bf16.msra.mxu2 %v2351_v61  ;;  %v2811_v27 = vor.u32 %v3214_v19, %v2810_v18  ;;  %v3178_v30 = vld [vmem:[#allocation7 + $0x46c] sm:$0xf0]  ;;  %v2794_v31 = vld [vmem:[#allocation7 + $0x560] sm:$0xf]  ;;  %v3072_v0 = vld [vmem:[#allocation7 + $0x124] sm:$0xf]  ;;  %v2127_v7 = vor.u32 %v3040_v62, %v2124_v63 }
  0x3f   :  { %1393 = vmatpush.bf16.msrb.mxu3 %v2207_v2  ;;  %v3210_v32 = vld [vmem:[#allocation7 + $0x56c] sm:$0xf0]  ;;  %v2667_v37 = vor.u32 %v3178_v30, %v2666_v29  ;;  %v2650_v42 = vld [vmem:[#allocation7 + $0x440] sm:$0xf]  ;;  %v2252_v3 = vld [vmem:[#allocation7 + $0x130] sm:$0xf0] }
  0x40   :  { %1355 = vmatpush.bf16.msrb.mxu0 %v2699_v11  ;;  %v2795_v40 = vor.u32 %v3210_v32, %v2794_v31  ;;  %v3174_v43 = vld [vmem:[#allocation7 + $0x44c] sm:$0xf0]  ;;  %v2778_v44 = vld [vmem:[#allocation7 + $0x540] sm:$0xf]  ;;  %v85_v5 = vld [vmem:[#allocation4 + $0x10] sm:$0xff]  ;;  %v2255_v19 = vor.u32 %v3072_v0, %v2252_v3 }
  0x41   :  { %1368 = vmatpush.bf16.msrb.mxu1 %v2827_v14  ;;  %v3206_v45 = vld [vmem:[#allocation7 + $0x54c] sm:$0xf0]  ;;  %v2651_v50 = vor.u32 %v3174_v43, %v2650_v42  ;;  %v2634_v56 = vld [vmem:[#allocation7 + $0x420] sm:$0xf]  ;;  %v3036_v12 = vld [vmem:[#allocation7 + $0x4] sm:$0xf]  ;;  %v301_v18 = vunpack.c.l.b16 %v85_v5 }
  0x42   :  { %1406 = vmatpush.bf16.msra.mxu2 %v2335_v10  ;;  %v2779_v54 = vor.u32 %v3206_v45, %v2778_v44  ;;  %v3170_v58 = vld [vmem:[#allocation7 + $0x42c] sm:$0xf0]  ;;  %v2762_v59 = vld [vmem:[#allocation7 + $0x520] sm:$0xf]  ;;  %v2108_v13 = vld [vmem:[#allocation7 + $0x10] sm:$0xf0] }
  0x43   :  { %1394 = vmatpush.bf16.msrb.mxu3 %v2191_v15  ;;  %v3202_v61 = vld [vmem:[#allocation7 + $0x52c] sm:$0xf0]  ;;  %v2635_v2 = vor.u32 %v3170_v58, %v2634_v56  ;;  %v2618_v4 = vld [vmem:[#allocation7 + $0x400] sm:$0xf]  ;;  %v3128_v14 = vld [vmem:[#allocation7 + $0x2e4] sm:$0xf]  ;;  %v2111_v25 = vor.u32 %v3036_v12, %v2108_v13  ;;  %v3490_v34 = vpack.c.b16 %v301_v18, %v301_v18 }
  0x44   :  { %1356 = vmatpush.bf16.msrb.mxu0 %v2683_v24  ;;  %v2763_v6 = vor.u32 %v3202_v61, %v2762_v59  ;;  %v3166_v8 = vld [vmem:[#allocation7 + $0x40c] sm:$0xf0]  ;;  %v2746_v10 = vld [vmem:[#allocation7 + $0x500] sm:$0xf]  ;;  %v2476_v15 = vld [vmem:[#allocation7 + $0x2f0] sm:$0xf0] }
  0x45   :  { %1369 = vmatpush.bf16.msrb.mxu1 %v2811_v27  ;;  %v3198_v11 = vld [vmem:[#allocation7 + $0x50c] sm:$0xf0]  ;;  %v3160_v16 = vld [vmem:[#allocation7 + $0x3e4] sm:$0xf]  ;;  %v2604_v17 = vld [vmem:[#allocation7 + $0x3f0] sm:$0xf0]  ;;  %v2619_v20 = vor.u32 %v3166_v8, %v2618_v4 }
  0x46   :  { %1407 = vmatpush.bf16.msra.mxu2 %v2319_v23  ;;  %v3192_v21 = vld [vmem:[#allocation7 + $0x4e4] sm:$0xf]  ;;  %v2732_v22 = vld [vmem:[#allocation7 + $0x4f0] sm:$0xf0]  ;;  %v302_v23 = vunpack.c.h.b16 %v85_v5  ;;  %v2747_v24 = vor.u32 %v3198_v11, %v2746_v10  ;;  %v2607_v29 = vor.u32 %v3160_v16, %v2604_v17 }
  0x47   :  { %1395 = vmatpush.bf16.msrb.mxu3 %v2175_v28  ;;  %v3068_v26 = vld [vmem:[#allocation7 + $0x104] sm:$0xf]  ;;  %v2236_v27 = vld [vmem:[#allocation7 + $0x110] sm:$0xf0]  ;;  %v2479_v28 = vor.u32 %v3128_v14, %v2476_v15  ;;  %v2735_v33 = vor.u32 %v3192_v21, %v2732_v22 }
  0x48   :  { %1357 = vmatpush.bf16.msrb.mxu0 %v2667_v37  ;;  %2888 = vmatmul.msk.bf16.vlgmr.msrb.gmra.mxu2 %vm1297_vm0, %v3486_v48  ;;  %v3224_v30 = vld [vmem:[#allocation7 + $0x5e4] sm:$0xf]  ;;  %v2860_v31 = vld [vmem:[#allocation7 + $0x5f0] sm:$0xf0]  ;;  %v2239_v38 = vor.u32 %v3068_v26, %v2236_v27  ;;  %v3492_v39 = vpack.c.b16 %v302_v23, %v302_v23 }
  0x49   :  { %1370 = vmatpush.bf16.msrb.mxu1 %v2795_v40  ;;  %v3124_v32 = vld [vmem:[#allocation7 + $0x2c4] sm:$0xf]  ;;  %v2460_v35 = vld [vmem:[#allocation7 + $0x2d0] sm:$0xf0]  ;;  %v2863_v42 = vor.u32 %v3224_v30, %v2860_v31 }
  0x4a   :  { %1408 = vmatpush.bf16.msra.mxu2 %v2303_v36  ;;  %v3156_v36 = vld [vmem:[#allocation7 + $0x3c4] sm:$0xf]  ;;  %v2588_v37 = vld [vmem:[#allocation7 + $0x3d0] sm:$0xf0]  ;;  %v2463_v43 = vor.u32 %v3124_v32, %v2460_v35 }
  0x4b   :  { %1396 = vmatpush.bf16.msrb.mxu3 %v2159_v41  ;;  %v3188_v40 = vld [vmem:[#allocation7 + $0x4c4] sm:$0xf]  ;;  %v2716_v41 = vld [vmem:[#allocation7 + $0x4d0] sm:$0xf0]  ;;  %v2591_v44 = vor.u32 %v3156_v36, %v2588_v37 }
  0x4c   :  { %1358 = vmatpush.bf16.msrb.mxu0 %v2651_v50  ;;  %v3220_v45 = vld [vmem:[#allocation7 + $0x5c4] sm:$0xf]  ;;  %v2844_v46 = vld [vmem:[#allocation7 + $0x5d0] sm:$0xf0] }
  0x4d   :  { %1371 = vmatpush.bf16.msrb.mxu1 %v2779_v54  ;;  %v3120_v47 = vld [vmem:[#allocation7 + $0x2a4] sm:$0xf]  ;;  %v2444_v50 = vld [vmem:[#allocation7 + $0x2b0] sm:$0xf0]  ;;  %v2847_v56 = vor.u32 %v3220_v45, %v2844_v46 }
  0x4e   :  { %1409 = vmatpush.bf16.msra.mxu2 %v2287_v49  ;;  %v2719_v49 = vor.u32 %v3188_v40, %v2716_v41  ;;  %v3152_v51 = vld [vmem:[#allocation7 + $0x3a4] sm:$0xf]  ;;  %v2572_v52 = vld [vmem:[#allocation7 + $0x3b0] sm:$0xf0]  ;;  %v2447_v58 = vor.u32 %v3120_v47, %v2444_v50 }
  0x4f   :  { %1397 = vmatpush.bf16.msrb.mxu3 %v2143_v55  ;;  %v3184_v54 = vld [vmem:[#allocation7 + $0x4a4] sm:$0xf]  ;;  %v2700_v55 = vld [vmem:[#allocation7 + $0x4b0] sm:$0xf0]  ;;  %v2575_v59 = vor.u32 %v3152_v51, %v2572_v52 }
  0x50   :  { %1359 = vmatpush.bf16.msrb.mxu0 %v2635_v2  ;;  %v3216_v61 = vld [vmem:[#allocation7 + $0x5a4] sm:$0xf]  ;;  %v2828_v62 = vld [vmem:[#allocation7 + $0x5b0] sm:$0xf0]  ;;  %v2703_v0 = vor.u32 %v3184_v54, %v2700_v55 }
  0x51   :  { %1372 = vmatpush.bf16.msrb.mxu1 %v2763_v6  ;;  %v3116_v63 = vld [vmem:[#allocation7 + $0x284] sm:$0xf]  ;;  %v2556_v3 = vld [vmem:[#allocation7 + $0x390] sm:$0xf0]  ;;  %v2831_v6 = vor.u32 %v3216_v61, %v2828_v62  ;;  %v2226_v61 = vld [vmem:[#allocation7 + $0xe8] sm:$0xf] }
  0x52   :  { %1410 = vmatpush.bf16.msra.mxu2 %v2271_v1  ;;  %v2428_v1 = vld [vmem:[#allocation7 + $0x290] sm:$0xf0]  ;;  %v3148_v2 = vld [vmem:[#allocation7 + $0x384] sm:$0xf]  ;;  %v3067_v62 = vld [vmem:[#allocation7 + $0xf4] sm:$0xf0] }
  0x53   :  { %1398 = vmatpush.bf16.msrb.mxu3 %v2127_v7  ;;  %v3180_v4 = vld [vmem:[#allocation7 + $0x484] sm:$0xf]  ;;  %v2684_v5 = vld [vmem:[#allocation7 + $0x490] sm:$0xf0]  ;;  %v2431_v7 = vor.u32 %v3116_v63, %v2428_v1  ;;  %v2559_v8 = vor.u32 %v3148_v2, %v2556_v3  ;;  %v2482_v2 = vld [vmem:[#allocation7 + $0x2e8] sm:$0xf] }
  0x54   :  { %1360 = vmatpush.bf16.msrb.mxu0 %v2619_v20  ;;  %v3212_v10 = vld [vmem:[#allocation7 + $0x584] sm:$0xf]  ;;  %v2812_v11 = vld [vmem:[#allocation7 + $0x590] sm:$0xf0]  ;;  %v2687_v13 = vor.u32 %v3180_v4, %v2684_v5  ;;  %v3131_v3 = vld [vmem:[#allocation7 + $0x2f4] sm:$0xf0] }
  0x55   :  { %1373 = vmatpush.bf16.msrb.mxu1 %v2747_v24  ;;  %v3112_v12 = vld [vmem:[#allocation7 + $0x264] sm:$0xf]  ;;  %v2412_v14 = vld [vmem:[#allocation7 + $0x270] sm:$0xf0] }
  0x56   :  { %1411 = vmatpush.bf16.msra.mxu2 %v2255_v19  ;;  %v3144_v15 = vld [vmem:[#allocation7 + $0x364] sm:$0xf]  ;;  %v2540_v16 = vld [vmem:[#allocation7 + $0x370] sm:$0xf0]  ;;  %v2815_v19 = vor.u32 %v3212_v10, %v2812_v11  ;;  %v2415_v20 = vor.u32 %v3112_v12, %v2412_v14  ;;  %v2227_v10 = vor.u32 %v3067_v62, %v2226_v61  ;;  %v2610_v11 = vld [vmem:[#allocation7 + $0x3e8] sm:$0xf] }
  0x57   :  { %1399 = vmatpush.bf16.msrb.mxu3 %v2111_v25  ;;  %1361 = vmatmul.bf16.vlgmr.msrb.gmra.mxu0 %v3490_v34  ;;  %v3176_v17 = vld [vmem:[#allocation7 + $0x464] sm:$0xf]  ;;  %v2668_v18 = vld [vmem:[#allocation7 + $0x470] sm:$0xf0]  ;;  %v2543_v21 = vor.u32 %v3144_v15, %v2540_v16  ;;  %v3163_v12 = vld [vmem:[#allocation7 + $0x3f4] sm:$0xf0]  ;;  %v2483_v16 = vor.u32 %v3131_v3, %v2482_v2 }
  0x58   :  { %1418 = vmatpush.bf16.msra.mxu0 %v2479_v28  ;;  %1374 = vmatmul.bf16.vlgmr.msrb.gmra.mxu1 %v3492_v39  ;;  %v3208_v22 = vld [vmem:[#allocation7 + $0x564] sm:$0xf]  ;;  %v2796_v23 = vld [vmem:[#allocation7 + $0x570] sm:$0xf0]  ;;  %v2671_v25 = vor.u32 %v3176_v17, %v2668_v18  ;;  %v2354_v14 = vld [vmem:[#allocation7 + $0x1e8] sm:$0xf] }
  0x59   :  { %1431 = vmatpush.bf16.msra.mxu1 %v2607_v29  ;;  %v3108_v24 = vld [vmem:[#allocation7 + $0x244] sm:$0xf]  ;;  %v2396_v26 = vld [vmem:[#allocation7 + $0x250] sm:$0xf0]  ;;  %v2799_v31 = vor.u32 %v3208_v22, %v2796_v23  ;;  %v3099_v15 = vld [vmem:[#allocation7 + $0x1f4] sm:$0xf0] }
  0x5a   :  { %1412 = vmatpush.bf16.msra.mxu2 %v2239_v38  ;;  %1400 = vmatmul.bf16.vlgmr.msrb.gmra.mxu3 %v3476_v57  ;;  %v3140_v27 = vld [vmem:[#allocation7 + $0x344] sm:$0xf]  ;;  %v2524_v28 = vld [vmem:[#allocation7 + $0x350] sm:$0xf0]  ;;  %v2399_v32 = vor.u32 %v3108_v24, %v2396_v26  ;;  %v2210_v18 = vld [vmem:[#allocation7 + $0xc8] sm:$0xf]  ;;  %v2355_v23 = vor.u32 %v3099_v15, %v2354_v14 }
  0x5b   :  { %1444 = vmatpush.bf16.msra.mxu3 %v2735_v33  ;;  %v3172_v29 = vld [vmem:[#allocation7 + $0x444] sm:$0xf]  ;;  %v2652_v30 = vld [vmem:[#allocation7 + $0x450] sm:$0xf0]  ;;  %v2527_v33 = vor.u32 %v3140_v27, %v2524_v28  ;;  %v3127_v22 = vld [vmem:[#allocation7 + $0x2d4] sm:$0xf0] }
  0x5c   :  { %1419 = vmatpush.bf16.msra.mxu0 %v2463_v43  ;;  %v3204_v35 = vld [vmem:[#allocation7 + $0x544] sm:$0xf]  ;;  %v2780_v36 = vld [vmem:[#allocation7 + $0x550] sm:$0xf0]  ;;  %v2655_v38 = vor.u32 %v3172_v29, %v2652_v30  ;;  %v2594_v24 = vld [vmem:[#allocation7 + $0x3c8] sm:$0xf] }
  0x5d   :  { %1432 = vmatpush.bf16.msra.mxu1 %v2591_v44  ;;  %1413 = vmatmul.bf16.vlgmr.msra.gmra.mxu2 %v3482_v9  ;;  %v3104_v37 = vld [vmem:[#allocation7 + $0x224] sm:$0xf]  ;;  %v2380_v40 = vld [vmem:[#allocation7 + $0x230] sm:$0xf0]  ;;  %v2783_v45 = vor.u32 %v3204_v35, %v2780_v36  ;;  %v2338_v27 = vld [vmem:[#allocation7 + $0x1c8] sm:$0xf] }
  0x5e   :  { %1457 = vmatpush.bf16.msrb.mxu2 %v2863_v42  ;;  %v3136_v41 = vld [vmem:[#allocation7 + $0x324] sm:$0xf]  ;;  %v2508_v42 = vld [vmem:[#allocation7 + $0x330] sm:$0xf0]  ;;  %v2383_v50 = vor.u32 %v3104_v37, %v2380_v40  ;;  %v3095_v28 = vld [vmem:[#allocation7 + $0x1d4] sm:$0xf0] }
  0x5f   :  { %1445 = vmatpush.bf16.msra.mxu3 %v2719_v49  ;;  %v3168_v43 = vld [vmem:[#allocation7 + $0x424] sm:$0xf]  ;;  %v2636_v44 = vld [vmem:[#allocation7 + $0x430] sm:$0xf0]  ;;  %v2511_v51 = vor.u32 %v3136_v41, %v2508_v42  ;;  %v2194_v30 = vld [vmem:[#allocation7 + $0xa8] sm:$0xf]  ;;  %v2339_v36 = vor.u32 %v3095_v28, %v2338_v27 }
  0x60   :  { %1420 = vmatpush.bf16.msra.mxu0 %v2447_v58  ;;  %v3200_v46 = vld [vmem:[#allocation7 + $0x524] sm:$0xf]  ;;  %v2764_v47 = vld [vmem:[#allocation7 + $0x530] sm:$0xf0]  ;;  %v2639_v55 = vor.u32 %v3168_v43, %v2636_v44  ;;  %v3123_v35 = vld [vmem:[#allocation7 + $0x2b4] sm:$0xf0] }
  0x61   :  { %1433 = vmatpush.bf16.msra.mxu1 %v2575_v59  ;;  %v3100_v49 = vld [vmem:[#allocation7 + $0x204] sm:$0xf]  ;;  %v2364_v52 = vld [vmem:[#allocation7 + $0x210] sm:$0xf0]  ;;  %v2578_v37 = vld [vmem:[#allocation7 + $0x3a8] sm:$0xf] }
  0x62   :  { %1458 = vmatpush.bf16.msrb.mxu2 %v2847_v56  ;;  %v3132_v54 = vld [vmem:[#allocation7 + $0x304] sm:$0xf]  ;;  %v2492_v56 = vld [vmem:[#allocation7 + $0x310] sm:$0xf0]  ;;  %v2367_v4 = vor.u32 %v3100_v49, %v2364_v52  ;;  %v2322_v41 = vld [vmem:[#allocation7 + $0x1a8] sm:$0xf] }
  0x63   :  { %1446 = vmatpush.bf16.msra.mxu3 %v2703_v0  ;;  %v3164_v58 = vld [vmem:[#allocation7 + $0x404] sm:$0xf]  ;;  %v2620_v59 = vld [vmem:[#allocation7 + $0x410] sm:$0xf0]  ;;  %v2767_v0 = vor.u32 %v3200_v46, %v2764_v47  ;;  %v2495_v5 = vor.u32 %v3132_v54, %v2492_v56  ;;  %v3091_v42 = vld [vmem:[#allocation7 + $0x1b4] sm:$0xf0] }
  0x64   :  { %1421 = vmatpush.bf16.msra.mxu0 %v2431_v7  ;;  %v3228_v63 = vld [vmem:[#allocation7 + $0x604] sm:$0xf]  ;;  %v2876_v1 = vld [vmem:[#allocation7 + $0x610] sm:$0xf0]  ;;  %v2178_v44 = vld [vmem:[#allocation7 + $0x88] sm:$0xf] }
  0x65   :  { %1434 = vmatpush.bf16.msra.mxu1 %v2559_v8  ;;  %v2748_v7 = vld [vmem:[#allocation7 + $0x510] sm:$0xf0]  ;;  %v2623_v8 = vor.u32 %v3164_v58, %v2620_v59  ;;  %v2434_v47 = vld [vmem:[#allocation7 + $0x288] sm:$0xf]  ;;  %v3119_v49 = vld [vmem:[#allocation7 + $0x294] sm:$0xf0] }
  0x66   :  { %1459 = vmatpush.bf16.msrb.mxu2 %v2831_v6  ;;  %v3196_v6 = vld [vmem:[#allocation7 + $0x504] sm:$0xf]  ;;  %v3151_v52 = vld [vmem:[#allocation7 + $0x394] sm:$0xf0]  ;;  %v2435_v58 = vor.u32 %v3119_v49, %v2434_v47  ;;  %v2162_v59 = vld [vmem:[#allocation7 + $0x68] sm:$0xf] }
  0x67   :  { %1447 = vmatpush.bf16.msra.mxu3 %v2687_v13  ;;  %v2879_v13 = vor.u32 %v3228_v63, %v2876_v1  ;;  %v2751_v17 = vor.u32 %v3196_v6, %v2748_v7  ;;  %v3087_v56 = vld [vmem:[#allocation7 + $0x194] sm:$0xf0]  ;;  %v2418_v63 = vld [vmem:[#allocation7 + $0x268] sm:$0xf] }
  0x68   :  { %1422 = vmatpush.bf16.msra.mxu0 %v2415_v20  ;;  %v2611_v20 = vor.u32 %v3163_v12, %v2610_v11  ;;  %v3051_v61 = vld [vmem:[#allocation7 + $0x74] sm:$0xf0]  ;;  %v2546_v2 = vld [vmem:[#allocation7 + $0x368] sm:$0xf] }
  0x69   :  { %1435 = vmatpush.bf16.msra.mxu1 %v2543_v21  ;;  %v2466_v21 = vld [vmem:[#allocation7 + $0x2c8] sm:$0xf]  ;;  %v3147_v3 = vld [vmem:[#allocation7 + $0x374] sm:$0xf0] }
  0x6a   :  { %1460 = vmatpush.bf16.msrb.mxu2 %v2815_v19  ;;  %v3063_v19 = vld [vmem:[#allocation7 + $0xd4] sm:$0xf0]  ;;  %v2467_v29 = vor.u32 %v3127_v22, %v2466_v21  ;;  %v2547_v11 = vor.u32 %v3147_v3, %v2546_v2  ;;  %v2402_v12 = vld [vmem:[#allocation7 + $0x248] sm:$0xf] }
  0x6b   :  { %1448 = vmatpush.bf16.msra.mxu3 %v2671_v25  ;;  %v3159_v25 = vld [vmem:[#allocation7 + $0x3d4] sm:$0xf0]  ;;  %v2211_v26 = vor.u32 %v3063_v19, %v2210_v18  ;;  %v2530_v15 = vld [vmem:[#allocation7 + $0x348] sm:$0xf] }
  0x6c   :  { %1423 = vmatpush.bf16.msra.mxu0 %v2399_v32  ;;  %v2595_v32 = vor.u32 %v3159_v25, %v2594_v24  ;;  %v3083_v6 = vld [vmem:[#allocation7 + $0x174] sm:$0xf0]  ;;  %v2274_v18 = vld [vmem:[#allocation7 + $0x148] sm:$0xf] }
  0x6d   :  { %1436 = vmatpush.bf16.msra.mxu1 %v2527_v33  ;;  %v2450_v33 = vld [vmem:[#allocation7 + $0x2a8] sm:$0xf]  ;;  %v3079_v19 = vld [vmem:[#allocation7 + $0x154] sm:$0xf0] }
  0x6e   :  { %1461 = vmatpush.bf16.msrb.mxu2 %v2799_v31  ;;  %v3059_v31 = vld [vmem:[#allocation7 + $0xb4] sm:$0xf0]  ;;  %v2451_v43 = vor.u32 %v3123_v35, %v2450_v33  ;;  %v2130_v21 = vld [vmem:[#allocation7 + $0x28] sm:$0xf] }
  0x6f   :  { %1449 = vmatpush.bf16.msra.mxu3 %v2655_v38  ;;  %v3155_v38 = vld [vmem:[#allocation7 + $0x3b4] sm:$0xf0]  ;;  %v2195_v40 = vor.u32 %v3059_v31, %v2194_v30  ;;  %v2386_v24 = vld [vmem:[#allocation7 + $0x228] sm:$0xf] }
  0x70   :  { %1424 = vmatpush.bf16.msra.mxu0 %v2383_v50  ;;  %v2579_v46 = vor.u32 %v3155_v38, %v2578_v37  ;;  %v2323_v50 = vor.u32 %v3091_v42, %v2322_v41  ;;  %v3043_v22 = vld [vmem:[#allocation7 + $0x34] sm:$0xf0]  ;;  %v2514_v27 = vld [vmem:[#allocation7 + $0x328] sm:$0xf] }
  0x71   :  { %1437 = vmatpush.bf16.msra.mxu1 %v2511_v51  ;;  %v2562_v51 = vld [vmem:[#allocation7 + $0x388] sm:$0xf]  ;;  %v3107_v25 = vld [vmem:[#allocation7 + $0x234] sm:$0xf0] }
  0x72   :  { %1462 = vmatpush.bf16.msrb.mxu2 %v2783_v45  ;;  %v3055_v45 = vld [vmem:[#allocation7 + $0x94] sm:$0xf0]  ;;  %v2563_v62 = vor.u32 %v3151_v52, %v2562_v51  ;;  %v2258_v30 = vld [vmem:[#allocation7 + $0x128] sm:$0xf]  ;;  %v2387_v33 = vor.u32 %v3107_v25, %v2386_v24  ;;  %v3065_v51 = vld [vmem:[#allocation7 + $0xec] sm:$0xf] }
  0x73   :  { %1450 = vmatpush.bf16.msra.mxu3 %v2639_v55  ;;  %v2179_v54 = vor.u32 %v3055_v45, %v2178_v44  ;;  %v2306_v55 = vld [vmem:[#allocation7 + $0x188] sm:$0xf]  ;;  %v3139_v28 = vld [vmem:[#allocation7 + $0x334] sm:$0xf0]  ;;  %v2228_v52 = vld [vmem:[#allocation7 + $0xf8] sm:$0xf0] }
  0x74   :  { %1425 = vmatpush.bf16.msra.mxu0 %v2367_v4  ;;  %v2307_v1 = vor.u32 %v3087_v56, %v2306_v55  ;;  %v2163_v4 = vor.u32 %v3051_v61, %v2162_v59  ;;  %v3075_v31 = vld [vmem:[#allocation7 + $0x134] sm:$0xf0]  ;;  %v2515_v38 = vor.u32 %v3139_v28, %v2514_v27  ;;  %v2370_v41 = vld [vmem:[#allocation7 + $0x208] sm:$0xf]  ;;  %v2231_v3 = vor.u32 %v3065_v51, %v2228_v52  ;;  %v2324_v27 = vld [vmem:[#allocation7 + $0x1b8] sm:$0xf0] }
  0x75   :  { %1438 = vmatpush.bf16.msra.mxu1 %v2495_v5  ;;  %v2290_v5 = vld [vmem:[#allocation7 + $0x168] sm:$0xf]  ;;  %v3039_v35 = vld [vmem:[#allocation7 + $0x14] sm:$0xf0]  ;;  %v2259_v44 = vor.u32 %v3075_v31, %v2258_v30  ;;  %v3053_v30 = vld [vmem:[#allocation7 + $0x8c] sm:$0xf] }
  0x76   :  { %1463 = vmatpush.bf16.msrb.mxu2 %v2767_v0  ;;  %v3115_v0 = vld [vmem:[#allocation7 + $0x274] sm:$0xf0]  ;;  %v2291_v14 = vor.u32 %v3083_v6, %v2290_v5  ;;  %v2866_v56 = vld [vmem:[#allocation7 + $0x5e8] sm:$0xf]  ;;  %v3061_v5 = vld [vmem:[#allocation7 + $0xcc] sm:$0xf] }
  0x77   :  { %1451 = vmatpush.bf16.msra.mxu3 %v2623_v8  ;;  %1426 = vmatmul.bf16.vlgmr.msra.gmra.mxu0 %v3474_v53  ;;  %v2419_v7 = vor.u32 %v3115_v0, %v2418_v63  ;;  %v2146_v8 = vld [vmem:[#allocation7 + $0x48] sm:$0xf]  ;;  %v3195_v37 = vld [vmem:[#allocation7 + $0x4f4] sm:$0xf0]  ;;  %v3097_v0 = vld [vmem:[#allocation7 + $0x1ec] sm:$0xf] }
  0x78   :  { %1509 = vmatpush.bf16.msrb.mxu0 %v2483_v16  ;;  %1439 = vmatmul.bf16.vlgmr.msra.gmra.mxu1 %v3478_v60  ;;  %v3143_v16 = vld [vmem:[#allocation7 + $0x354] sm:$0xf0]  ;;  %v2722_v59 = vld [vmem:[#allocation7 + $0x4c8] sm:$0xf]  ;;  %v2212_v6 = vld [vmem:[#allocation7 + $0xd8] sm:$0xf0] }
  0x79   :  { %1483 = vmatpush.bf16.msrb.mxu1 %v2227_v10  ;;  %v3047_v10 = vld [vmem:[#allocation7 + $0x54] sm:$0xf0]  ;;  %v2690_v24 = vld [vmem:[#allocation7 + $0x488] sm:$0xf]  ;;  %v2180_v31 = vld [vmem:[#allocation7 + $0x98] sm:$0xf0] }
  0x7a   :  { %1464 = vmatpush.bf16.msrb.mxu2 %v2751_v17  ;;  %1452 = vmatmul.bf16.vlgmr.msra.gmra.mxu3 %v3490_v34  ;;  %v2147_v17 = vor.u32 %v3047_v10, %v2146_v8  ;;  %v3103_v42 = vld [vmem:[#allocation7 + $0x214] sm:$0xf0]  ;;  %v2850_v10 = vld [vmem:[#allocation7 + $0x5c8] sm:$0xf] }
  0x7b   :  { %1477 = vmatpush.bf16.msrb.mxu3 %v2879_v13  ;;  %v3111_v13 = vld [vmem:[#allocation7 + $0x254] sm:$0xf0]  ;;  %v2371_v55 = vor.u32 %v3103_v42, %v2370_v41  ;;  %v2308_v41 = vld [vmem:[#allocation7 + $0x198] sm:$0xf0]  ;;  %v2183_v42 = vor.u32 %v3053_v30, %v2180_v31  ;;  %v2658_v51 = vld [vmem:[#allocation7 + $0x448] sm:$0xf] }
  0x7c   :  { %1510 = vmatpush.bf16.msrb.mxu0 %v2467_v29  ;;  %v2131_v29 = vor.u32 %v3043_v22, %v2130_v21  ;;  %v3135_v45 = vld [vmem:[#allocation7 + $0x314] sm:$0xf0]  ;;  %v2834_v22 = vld [vmem:[#allocation7 + $0x5a8] sm:$0xf]  ;;  %v2612_v30 = vld [vmem:[#allocation7 + $0x3f8] sm:$0xf0] }
  0x7d   :  { %1484 = vmatpush.bf16.msrb.mxu1 %v2211_v26  ;;  %1465 = vmatmul.bf16.vlgmr.msrb.gmra.mxu2 %v3492_v39  ;;  %v2275_v26 = vor.u32 %v3079_v19, %v2274_v18  ;;  %v3231_v47 = vld [vmem:[#allocation7 + $0x614] sm:$0xf0]  ;;  %v3057_v18 = vld [vmem:[#allocation7 + $0xac] sm:$0xf]  ;;  %v2196_v19 = vld [vmem:[#allocation7 + $0xb8] sm:$0xf0] }
  0x7e   :  { %1522 = vmatpush.bf16.msra.mxu2 %v2611_v20  ;;  %v2403_v20 = vor.u32 %v3111_v13, %v2402_v12  ;;  %v2706_v12 = vld [vmem:[#allocation7 + $0x4a8] sm:$0xf]  ;;  %v3187_v13 = vld [vmem:[#allocation7 + $0x4b4] sm:$0xf0]  ;;  %v2199_v28 = vor.u32 %v3057_v18, %v2196_v19  ;;  %v2260_v18 = vld [vmem:[#allocation7 + $0x138] sm:$0xf0] }
  0x7f   :  { %1496 = vmatpush.bf16.msra.mxu3 %v2355_v23  ;;  %v2531_v23 = vor.u32 %v3143_v16, %v2530_v15  ;;  %v2340_v15 = vld [vmem:[#allocation7 + $0x1d8] sm:$0xf0]  ;;  %v2215_v16 = vor.u32 %v3061_v5, %v2212_v6  ;;  %v3183_v25 = vld [vmem:[#allocation7 + $0x494] sm:$0xf0] }
  0x80   :  { %1511 = vmatpush.bf16.msrb.mxu0 %v2451_v43  ;;  %v2498_v43 = vld [vmem:[#allocation7 + $0x308] sm:$0xf]  ;;  %v3175_v52 = vld [vmem:[#allocation7 + $0x454] sm:$0xf0]  ;;  %v2276_v5 = vld [vmem:[#allocation7 + $0x158] sm:$0xf0] }
  0x81   :  { %1485 = vmatpush.bf16.msrb.mxu1 %v2195_v40  ;;  %v2242_v40 = vld [vmem:[#allocation7 + $0x108] sm:$0xf]  ;;  %v2499_v61 = vor.u32 %v3135_v45, %v2498_v43  ;;  %v2164_v45 = vld [vmem:[#allocation7 + $0x78] sm:$0xf0] }
  0x82   :  { %1523 = vmatpush.bf16.msra.mxu2 %v2595_v32  ;;  %v2114_v32 = vld [vmem:[#allocation7 + $0x8] sm:$0xf] }
  0x83   :  { %1497 = vmatpush.bf16.msra.mxu3 %v2339_v36  ;;  %v2738_v36 = vld [vmem:[#allocation7 + $0x4e8] sm:$0xf]  ;;  %v2115_v49 = vor.u32 %v3039_v35, %v2114_v32  ;;  %v2691_v32 = vor.u32 %v3183_v25, %v2690_v24  ;;  %v3037_v24 = vld [vmem:[#allocation7 + $0xc] sm:$0xf]  ;;  %v2116_v25 = vld [vmem:[#allocation7 + $0x18] sm:$0xf0] }
  0x84   :  { %1512 = vmatpush.bf16.msrb.mxu0 %v2435_v58  ;;  %v3227_v58 = vld [vmem:[#allocation7 + $0x5f4] sm:$0xf0]  ;;  %v2818_v35 = vld [vmem:[#allocation7 + $0x588] sm:$0xf] }
  0x85   :  { %1486 = vmatpush.bf16.msrb.mxu1 %v2179_v54  ;;  %v2739_v54 = vor.u32 %v3195_v37, %v2738_v36  ;;  %v3215_v36 = vld [vmem:[#allocation7 + $0x594] sm:$0xf0]  ;;  %v2674_v37 = vld [vmem:[#allocation7 + $0x468] sm:$0xf] }
  0x86   :  { %1524 = vmatpush.bf16.msra.mxu2 %v2579_v46  ;;  %v2882_v46 = vld [vmem:[#allocation7 + $0x608] sm:$0xf]  ;;  %v2819_v43 = vor.u32 %v3215_v36, %v2818_v35  ;;  %v3125_v35 = vld [vmem:[#allocation7 + $0x2cc] sm:$0xf]  ;;  %v2119_v36 = vor.u32 %v3037_v24, %v2116_v25  ;;  %v2820_v25 = vld [vmem:[#allocation7 + $0x598] sm:$0xf0] }
  0x87   :  { %1498 = vmatpush.bf16.msra.mxu3 %v2323_v50  ;;  %v3071_v50 = vld [vmem:[#allocation7 + $0x114] sm:$0xf0]  ;;  %v2883_v63 = vor.u32 %v3231_v47, %v2882_v46  ;;  %v3213_v24 = vld [vmem:[#allocation7 + $0x58c] sm:$0xf] }
  0x88   :  { %1513 = vmatpush.bf16.msrb.mxu0 %v2419_v7  ;;  %v2243_v2 = vor.u32 %v3071_v50, %v2242_v40  ;;  %v3085_v40 = vld [vmem:[#allocation7 + $0x18c] sm:$0xf]  ;;  %v3211_v50 = vld [vmem:[#allocation7 + $0x574] sm:$0xf0] }
  0x89   :  { %1487 = vmatpush.bf16.msrb.mxu1 %v2163_v4  ;;  %v2867_v4 = vor.u32 %v3227_v58, %v2866_v56  ;;  %v2311_v47 = vor.u32 %v3085_v40, %v2308_v41  ;;  %v2244_v40 = vld [vmem:[#allocation7 + $0x118] sm:$0xf0] }
  0x8a   :  { %1525 = vmatpush.bf16.msra.mxu2 %v2563_v62  ;;  %2889 = vmatmul.msk.bf16.vlgmr.msrb.gmra.mxu3 %vm1297_vm0, %v3486_v48  ;;  %v3191_v62 = vld [vmem:[#allocation7 + $0x4d4] sm:$0xf0] }
  0x8b   :  { %1499 = vmatpush.bf16.msra.mxu3 %v2307_v1  ;;  %v2356_v1 = vld [vmem:[#allocation7 + $0x1f8] sm:$0xf0]  ;;  %v2723_v7 = vor.u32 %v3191_v62, %v2722_v59  ;;  %v3045_v59 = vld [vmem:[#allocation7 + $0x4c] sm:$0xf]  ;;  %v2659_v62 = vor.u32 %v3175_v52, %v2658_v51 }
  0x8c   :  { %1514 = vmatpush.bf16.msrb.mxu0 %v2403_v20  ;;  %v2359_v8 = vor.u32 %v3097_v0, %v2356_v1  ;;  %v2707_v20 = vor.u32 %v3187_v13, %v2706_v12  ;;  %v2786_v0 = vld [vmem:[#allocation7 + $0x548] sm:$0xf]  ;;  %v3207_v1 = vld [vmem:[#allocation7 + $0x554] sm:$0xf0]  ;;  %v3189_v51 = vld [vmem:[#allocation7 + $0x4cc] sm:$0xf] }
  0x8d   :  { %1488 = vmatpush.bf16.msrb.mxu1 %v2147_v17  ;;  %v2770_v13 = vld [vmem:[#allocation7 + $0x528] sm:$0xf]  ;;  %v2724_v52 = vld [vmem:[#allocation7 + $0x4d8] sm:$0xf0] }
  0x8e   :  { %1526 = vmatpush.bf16.msra.mxu2 %v2547_v11  ;;  %v3223_v11 = vld [vmem:[#allocation7 + $0x5d4] sm:$0xf0] }
  0x8f   :  { %1500 = vmatpush.bf16.msra.mxu3 %v2291_v14  ;;  %v3093_v14 = vld [vmem:[#allocation7 + $0x1cc] sm:$0xf]  ;;  %v2851_v17 = vor.u32 %v3223_v11, %v2850_v10  ;;  %v2132_v10 = vld [vmem:[#allocation7 + $0x38] sm:$0xf0] }
  0x90   :  { %1515 = vmatpush.bf16.msrb.mxu0 %v2387_v33  ;;  %v2343_v21 = vor.u32 %v3093_v14, %v2340_v15  ;;  %v3203_v14 = vld [vmem:[#allocation7 + $0x534] sm:$0xf0]  ;;  %v2626_v15 = vld [vmem:[#allocation7 + $0x408] sm:$0xf] }
  0x91   :  { %1489 = vmatpush.bf16.msrb.mxu1 %v2131_v29 }
  0x92   :  { %1527 = vmatpush.bf16.msra.mxu2 %v2531_v23  ;;  %v3219_v23 = vld [vmem:[#allocation7 + $0x5b4] sm:$0xf0] }
  0x93   :  { %1501 = vmatpush.bf16.msra.mxu3 %v2275_v26  ;;  %v3089_v26 = vld [vmem:[#allocation7 + $0x1ac] sm:$0xf]  ;;  %v2835_v29 = vor.u32 %v3219_v23, %v2834_v22  ;;  %v2771_v22 = vor.u32 %v3203_v14, %v2770_v13  ;;  %v2754_v23 = vld [vmem:[#allocation7 + $0x508] sm:$0xf] }
  0x94   :  { %1516 = vmatpush.bf16.msrb.mxu0 %v2371_v55  ;;  %v2327_v33 = vor.u32 %v3089_v26, %v2324_v27  ;;  %v2292_v55 = vld [vmem:[#allocation7 + $0x178] sm:$0xf0]  ;;  %v3149_v14 = vld [vmem:[#allocation7 + $0x38c] sm:$0xf] }
  0x95   :  { %1490 = vmatpush.bf16.msrb.mxu1 %v2115_v49  ;;  %v2802_v49 = vld [vmem:[#allocation7 + $0x568] sm:$0xf] }
  0x96   :  { %1528 = vmatpush.bf16.msra.mxu2 %v2515_v38  ;;  %v3179_v38 = vld [vmem:[#allocation7 + $0x474] sm:$0xf0]  ;;  %v2803_v58 = vor.u32 %v3211_v50, %v2802_v49  ;;  %v2596_v50 = vld [vmem:[#allocation7 + $0x3d8] sm:$0xf0] }
  0x97   :  { %1502 = vmatpush.bf16.msra.mxu3 %v2259_v44  ;;  %1517 = vmatmul.bf16.vlgmr.msrb.gmra.mxu0 %v3474_v53  ;;  %v3049_v44 = vld [vmem:[#allocation7 + $0x6c] sm:$0xf]  ;;  %v2675_v46 = vor.u32 %v3179_v38, %v2674_v37  ;;  %v2468_v37 = vld [vmem:[#allocation7 + $0x2d8] sm:$0xf0] }
  0x98   :  { %1568 = vmatpush.bf16.msra.mxu0 %v2883_v63  ;;  %1491 = vmatmul.bf16.vlgmr.msrb.gmra.mxu1 %v3476_v57  ;;  %v2167_v56 = vor.u32 %v3049_v44, %v2164_v45  ;;  %v3069_v38 = vld [vmem:[#allocation7 + $0x10c] sm:$0xf] }
  0x99   :  { %1535 = vmatpush.bf16.msra.mxu1 %v2739_v54  ;;  %v3081_v54 = vld [vmem:[#allocation7 + $0x16c] sm:$0xf]  ;;  %v2247_v49 = vor.u32 %v3069_v38, %v2244_v40  ;;  %v2804_v40 = vld [vmem:[#allocation7 + $0x578] sm:$0xf0] }
  0x9a   :  { %1529 = vmatpush.bf16.msra.mxu2 %v2499_v61  ;;  %v2148_v61 = vld [vmem:[#allocation7 + $0x58] sm:$0xf0]  ;;  %v2295_v63 = vor.u32 %v3081_v54, %v2292_v55  ;;  %v3121_v55 = vld [vmem:[#allocation7 + $0x2ac] sm:$0xf] }
  0x9b   :  { %1503 = vmatpush.bf16.msra.mxu3 %v2243_v2  ;;  %v2642_v2 = vld [vmem:[#allocation7 + $0x428] sm:$0xf]  ;;  %v2151_v6 = vor.u32 %v3045_v59, %v2148_v61  ;;  %v2852_v59 = vld [vmem:[#allocation7 + $0x5d8] sm:$0xf0]  ;;  %v1670_v61 = vlaneseq  ;;  %v3209_v38 = vld [vmem:[#allocation7 + $0x56c] sm:$0xf] }
  0x9c   :  { %1587 = vmatpush.bf16.msrb.mxu0 %v2359_v8  ;;  %v3041_v8 = vld [vmem:[#allocation7 + $0x2c] sm:$0xf] }
  0x9d   :  { %1536 = vmatpush.bf16.msra.mxu1 %v2723_v7  ;;  %1530 = vmatmul.bf16.vlgmr.msra.gmra.mxu2 %v3478_v60  ;;  %v2787_v7 = vor.u32 %v3207_v1, %v2786_v0  ;;  %v2135_v19 = vor.u32 %v3041_v8, %v2132_v10  ;;  %v3153_v0 = vld [vmem:[#allocation7 + $0x3ac] sm:$0xf]  ;;  %v1671_v8 = vshrl.u32 %v1670_v61, 7 }
  0x9e   :  { %1574 = vmatpush.bf16.msrb.mxu2 %v2231_v3  ;;  %1504 = vmatmul.bf16.vlgmr.msra.gmra.mxu3 %v3482_v9  ;;  %v3171_v3 = vld [vmem:[#allocation7 + $0x434] sm:$0xf0]  ;;  %v3217_v10 = vld [vmem:[#allocation7 + $0x5ac] sm:$0xf] }
  0x9f   :  { %1548 = vmatpush.bf16.msrb.mxu3 %v2867_v4  ;;  %v3077_v4 = vld [vmem:[#allocation7 + $0x14c] sm:$0xf]  ;;  %v2643_v11 = vor.u32 %v3171_v3, %v2642_v2  ;;  %v2580_v2 = vld [vmem:[#allocation7 + $0x3b8] sm:$0xf0] }
  0xa0   :  { %1588 = vmatpush.bf16.msrb.mxu0 %v2343_v21  ;;  %v2279_v12 = vor.u32 %v3077_v4, %v2276_v5  ;;  %v2484_v21 = vld [vmem:[#allocation7 + $0x2f8] sm:$0xf0]  ;;  %v3185_v3 = vld [vmem:[#allocation7 + $0x4ac] sm:$0xf] }
  0xa1   :  { %1537 = vmatpush.bf16.msra.mxu1 %v2707_v20  ;;  %v3129_v20 = vld [vmem:[#allocation7 + $0x2ec] sm:$0xf]  ;;  %v2708_v4 = vld [vmem:[#allocation7 + $0x4b8] sm:$0xf0] }
  0xa2   :  { %1575 = vmatpush.bf16.msrb.mxu2 %v2215_v16  ;;  %v3167_v16 = vld [vmem:[#allocation7 + $0x414] sm:$0xf0]  ;;  %v2487_v31 = vor.u32 %v3129_v20, %v2484_v21  ;;  %v2711_v13 = vor.u32 %v3185_v3, %v2708_v4  ;;  %v3113_v20 = vld [vmem:[#allocation7 + $0x26c] sm:$0xf]  ;;  %v2420_v21 = vld [vmem:[#allocation7 + $0x278] sm:$0xf0] }
  0xa3   :  { %1549 = vmatpush.bf16.msrb.mxu3 %v2851_v17  ;;  %v3073_v17 = vld [vmem:[#allocation7 + $0x12c] sm:$0xf]  ;;  %v2627_v26 = vor.u32 %v3167_v16, %v2626_v15  ;;  %v2564_v16 = vld [vmem:[#allocation7 + $0x398] sm:$0xf0] }
  0xa4   :  { %1589 = vmatpush.bf16.msrb.mxu0 %v2327_v33  ;;  %v2263_v27 = vor.u32 %v3073_v17, %v2260_v18  ;;  %v2740_v33 = vld [vmem:[#allocation7 + $0x4f8] sm:$0xf0]  ;;  %v3181_v17 = vld [vmem:[#allocation7 + $0x48c] sm:$0xf] }
  0xa5   :  { %1538 = vmatpush.bf16.msra.mxu1 %v2691_v32  ;;  %v3193_v32 = vld [vmem:[#allocation7 + $0x4ec] sm:$0xf]  ;;  %v2692_v18 = vld [vmem:[#allocation7 + $0x498] sm:$0xf0] }
  0xa6   :  { %1576 = vmatpush.bf16.msrb.mxu2 %v2199_v28  ;;  %v3199_v28 = vld [vmem:[#allocation7 + $0x514] sm:$0xf0]  ;;  %v2743_v45 = vor.u32 %v3193_v32, %v2740_v33  ;;  %v2823_v32 = vor.u32 %v3213_v24, %v2820_v25  ;;  %v3169_v3 = vld [vmem:[#allocation7 + $0x42c] sm:$0xf]  ;;  %v2644_v4 = vld [vmem:[#allocation7 + $0x438] sm:$0xf0] }
  0xa7   :  { %1550 = vmatpush.bf16.msrb.mxu3 %v2835_v29  ;;  %2890 = vmatmul.msk.bf16.vlgmr.msra.gmra.mxu0 %vm1297_vm0, %v3486_v48  ;;  %v3161_v29 = vld [vmem:[#allocation7 + $0x3ec] sm:$0xf]  ;;  %v2755_v41 = vor.u32 %v3199_v28, %v2754_v23  ;;  %v3518_v23 = vmul.u32 512, %v1671_v8  ;;  %v2423_v28 = vor.u32 %v3113_v20, %v2420_v21  ;;  %v2500_v21 = vld [vmem:[#allocation7 + $0x318] sm:$0xf0] }
  0xa8   :  { %1590 = vmatpush.bf16.msrb.mxu0 %v2311_v47  ;;  %v2615_v44 = vor.u32 %v3161_v29, %v2612_v30  ;;  %v2471_v47 = vor.u32 %v3125_v35, %v2468_v37  ;;  %v2548_v29 = vld [vmem:[#allocation7 + $0x378] sm:$0xf0]  ;;  %v3177_v30 = vld [vmem:[#allocation7 + $0x46c] sm:$0xf] }
  0xa9   :  { %1539 = vmatpush.bf16.msra.mxu1 %v2675_v46  ;;  %v3157_v46 = vld [vmem:[#allocation7 + $0x3cc] sm:$0xf] }
  0xaa   :  { %1577 = vmatpush.bf16.msrb.mxu2 %v2183_v42  ;;  %v3225_v42 = vld [vmem:[#allocation7 + $0x5ec] sm:$0xf] }
  0xab   :  { %1551 = vmatpush.bf16.msrb.mxu3 %v2819_v43  ;;  %v2868_v43 = vld [vmem:[#allocation7 + $0x5f8] sm:$0xf0]  ;;  %v3109_v35 = vld [vmem:[#allocation7 + $0x24c] sm:$0xf] }
  0xac   :  { %1591 = vmatpush.bf16.msrb.mxu0 %v2295_v63  ;;  %v2871_v54 = vor.u32 %v3225_v42, %v2868_v43  ;;  %v2727_v63 = vor.u32 %v3189_v51, %v2724_v52  ;;  %v2660_v51 = vld [vmem:[#allocation7 + $0x458] sm:$0xf0]  ;;  %v2807_v52 = vor.u32 %v3209_v38, %v2804_v40  ;;  %v3201_v8 = vld [vmem:[#allocation7 + $0x52c] sm:$0xf] }
  0xad   :  { %1540 = vmatpush.bf16.msra.mxu1 %v2659_v62  ;;  %v2599_v62 = vor.u32 %v3157_v46, %v2596_v50  ;;  %v3173_v50 = vld [vmem:[#allocation7 + $0x44c] sm:$0xf] }
  0xae   :  { %1578 = vmatpush.bf16.msrb.mxu2 %v2167_v56  ;;  %v2452_v56 = vld [vmem:[#allocation7 + $0x2b8] sm:$0xf0]  ;;  %v3133_v20 = vld [vmem:[#allocation7 + $0x30c] sm:$0xf] }
  0xaf   :  { %1552 = vmatpush.bf16.msrb.mxu3 %v2803_v58  ;;  %v3221_v58 = vld [vmem:[#allocation7 + $0x5cc] sm:$0xf]  ;;  %v2455_v1 = vor.u32 %v3121_v55, %v2452_v56  ;;  %v2388_v55 = vld [vmem:[#allocation7 + $0x238] sm:$0xf0] }
  0xb0   :  { %1592 = vmatpush.bf16.msrb.mxu0 %v2279_v12  ;;  %v2855_v5 = vor.u32 %v3221_v58, %v2852_v59  ;;  %v2583_v12 = vor.u32 %v3153_v0, %v2580_v2  ;;  %v3205_v59 = vld [vmem:[#allocation7 + $0x54c] sm:$0xf] }
  0xb1   :  { %1541 = vmatpush.bf16.msra.mxu1 %v2643_v11  ;;  %v2836_v11 = vld [vmem:[#allocation7 + $0x5b8] sm:$0xf0]  ;;  %v3137_v0 = vld [vmem:[#allocation7 + $0x32c] sm:$0xf] }
  0xb2   :  { %1579 = vmatpush.bf16.msrb.mxu2 %v2151_v6  ;;  %v3117_v6 = vld [vmem:[#allocation7 + $0x28c] sm:$0xf] }
  0xb3   :  { %1553 = vmatpush.bf16.msrb.mxu3 %v2787_v7  ;;  %v2436_v7 = vld [vmem:[#allocation7 + $0x298] sm:$0xf0] }
  0xb4   :  { %1593 = vmatpush.bf16.msrb.mxu0 %v2263_v27  ;;  %v2439_v15 = vor.u32 %v3117_v6, %v2436_v7  ;;  %v3145_v27 = vld [vmem:[#allocation7 + $0x36c] sm:$0xf]  ;;  %v3523_v33 = vpop.f32.mrf.mxu1  ;;  %v2372_v7 = vld [vmem:[#allocation7 + $0x218] sm:$0xf0] }
  0xb5   :  { %1542 = vmatpush.bf16.msra.mxu1 %v2627_v26  ;;  %v2567_v26 = vor.u32 %v3149_v14, %v2564_v16  ;;  %v2551_v43 = vor.u32 %v3145_v27, %v2548_v29  ;;  %v2884_v14 = vld [vmem:[#allocation7 + $0x618] sm:$0xf0]  ;;  %v3197_v29 = vld [vmem:[#allocation7 + $0x50c] sm:$0xf] }
  0xb6   :  { %1580 = vmatpush.bf16.msrb.mxu2 %v2135_v19  ;;  %v2839_v19 = vor.u32 %v3217_v10, %v2836_v11 }
  0xb7   :  { %1554 = vmatpush.bf16.msrb.mxu3 %v2771_v22  ;;  %v3514_v22 = vpop.f32.mrf.mxu0 }
  0xb8   :  { %1543 = vmatmul.bf16.vlgmr.msra.gmra.mxu1 %v3490_v34  ;;  %1594 = vmatpush.bf16.msrb.mxu0 %v2247_v49  ;;  %v2532_v49 = vld [vmem:[#allocation7 + $0x358] sm:$0xf0] }
  0xb9   :  { %1600 = vmatpush.bf16.msrb.mxu1 %v2487_v31  ;;  %v2676_v31 = vld [vmem:[#allocation7 + $0x478] sm:$0xf0] }
  0xba   :  { %1581 = vmatpush.bf16.msrb.mxu2 %v2119_v36  ;;  %v2404_v36 = vld [vmem:[#allocation7 + $0x258] sm:$0xf0] }
  0xbb   :  { %1555 = vmatpush.bf16.msrb.mxu3 %v2755_v41  ;;  %1595 = vmatmul.bf16.vlgmr.msrb.gmra.mxu0 %v3482_v9  ;;  %v2695_v9 = vor.u32 %v3181_v17, %v2692_v18  ;;  %v3527_v41 = vstv %s1685_s19  ;;  %v3529_v42 = vpop.f32.mrf.mxu2  ;;  %v2407_v46 = vor.u32 %v3109_v35, %v2404_v36  ;;  %v2647_v17 = vor.u32 %v3169_v3, %v2644_v4  ;;  %v3534_v18 = vld [vmem:[#allocation9] sm:$0xf] }
  0xbc   :  { %1639 = vmatpush.bf16.msra.mxu0 %v2871_v54  ;;  %v3105_v54 = vld [vmem:[#allocation7 + $0x22c] sm:$0xf]  ;;  %v1325_v10 = vpop.f32.mrf.mxu1  ;;  %v3239_v36 = vld [vmem:[#allocation10 + $0x38] sm:$0xff] }
  0xbd   :  { %1601 = vmatpush.bf16.msrb.mxu1 %v2471_v47  ;;  %1582 = vmatmul.bf16.vlgmr.msrb.gmra.mxu2 %v3476_v57  ;;  %v3516_v57 = vand.u32 127, %v1670_v61  ;;  %v3531_v47 = vpop.f32.mrf.mxu3  ;;  %v2788_v61 = vld [vmem:[#allocation7 + $0x558] sm:$0xf0]  ;;  %v2391_v2 = vor.u32 %v3105_v54, %v2388_v55 }
  0xbe   :  { %1626 = vmatpush.bf16.msra.mxu2 %v2743_v45  ;;  %1556 = vmatmul.bf16.vlgmr.msrb.gmra.mxu3 %v3492_v39  ;;  %v3141_v45 = vld [vmem:[#allocation7 + $0x34c] sm:$0xf]  ;;  %v2791_v6 = vor.u32 %v3205_v59, %v2788_v61 }
  0xbf   :  { %1613 = vmatpush.bf16.msra.mxu3 %v2615_v44  ;;  %v1680_v37 = vadd.s32 %v3518_v23, %v3516_v57  ;;  %v2679_v44 = vor.u32 %v3177_v30, %v2676_v31  ;;  %v1312_v56 = vpop.f32.mrf.mxu0  ;;  %v2756_v30 = vld [vmem:[#allocation7 + $0x518] sm:$0xf0]  ;;  %v285_v31 = vperm.slane %v3534_v18, 0 }
  0xc0   :  { %1640 = vmatpush.bf16.msra.mxu0 %v2855_v5  ;;  %v3101_v5 = vld [vmem:[#allocation7 + $0x20c] sm:$0xf]  ;;  %v3236_v56 = vld [vmem:[#allocation10 + $0x20] sm:$0xff] }
  0xc1   :  { %1602 = vmatpush.bf16.msrb.mxu1 %v2455_v1  ;;  %v1687_v58 = vadd.s32 %v3527_v41, %v1680_v37  ;;  %v2516_v1 = vld [vmem:[#allocation7 + $0x338] sm:$0xf0]  ;;  %v2759_v37 = vor.u32 %v3197_v29, %v2756_v30  ;;  %v1311_v40 = vadd.f32 %v3514_v22, %v285_v31  ;;  %v3237_v22 = vld [vmem:[#allocation10 + $0x28] sm:$0xff] }
  0xc2   :  { %1627 = vmatpush.bf16.msra.mxu2 %v2727_v63  ;;  %v2663_v63 = vor.u32 %v3173_v50, %v2660_v51  ;;  %v2519_v16 = vor.u32 %v3137_v0, %v2516_v1  ;;  %v3246_v51 = vld [vmem:[#allocation10 + $0x70] sm:$0xff]  ;;  %v3244_v0 = vld [vmem:[#allocation10 + $0x60] sm:$0xff] }
  0xc3   :  { %1614 = vmatpush.bf16.msra.mxu3 %v2599_v62  ;;  %v2535_v62 = vor.u32 %v3141_v45, %v2532_v49  ;;  %v1691_v11 = vshrl.u32 %v1687_v58, 16  ;;  %v3238_v45 = vld [vmem:[#allocation10 + $0x30] sm:$0xff]  ;;  %v1324_v49 = vadd.f32 %v3523_v33, %v1311_v40  ;;  %v3255_v40 = vld [vmem:[#allocation10 + $0xb8] sm:$0xff] }
  0xc4   :  { %1641 = vmatpush.bf16.msra.mxu0 %v2839_v19  ;;  %v2375_v19 = vor.u32 %v3101_v5, %v2372_v7  ;;  %v3234_v1 = vld [vmem:[#allocation10 + $0x10] sm:$0xff]  ;;  %v3243_v5 = vld [vmem:[#allocation10 + $0x58] sm:$0xff] }
  0xc5   :  { %1603 = vmatpush.bf16.msrb.mxu1 %v2439_v15  ;;  %v1338_v15 = vpop.f32.mrf.mxu2  ;;  %v1351_v24 = vpop.f32.mrf.mxu3  ;;  %v3242_v7 = vld [vmem:[#allocation10 + $0x50] sm:$0xff] }
  0xc6   :  { %1628 = vmatpush.bf16.msra.mxu2 %v2711_v13  ;;  %v3229_v13 = vld [vmem:[#allocation7 + $0x60c] sm:$0xf] }
  0xc7   :  { %1615 = vmatpush.bf16.msra.mxu3 %v2583_v12  ;;  %v2772_v12 = vld [vmem:[#allocation7 + $0x538] sm:$0xf0]  ;;  %v2887_v27 = vor.u32 %v3229_v13, %v2884_v14 }
  0xc8   :  { %1642 = vmatpush.bf16.msra.mxu0 %v2823_v32  ;;  %v2775_v25 = vor.u32 %v3201_v8, %v2772_v12  ;;  %v2503_v32 = vor.u32 %v3133_v20, %v2500_v21  ;;  %v3240_v20 = vld [vmem:[#allocation10 + $0x40] sm:$0xff] }
  0xc9   :  { %1604 = vmatpush.bf16.msrb.mxu1 %v2423_v28  ;;  %v1695_v28 = vxor.u32 %v1691_v11, %v1687_v58 }
  0xca   :  { %1629 = vmatpush.bf16.msra.mxu2 %v2695_v9  ;;  %v2628_v9 = vld [vmem:[#allocation7 + $0x418] sm:$0xf0] }
  0xcb   :  { %1616 = vmatpush.bf16.msra.mxu3 %v2567_v26  ;;  %v3165_v26 = vld [vmem:[#allocation7 + $0x40c] sm:$0xf]  ;;  %v1699_v38 = vmul.u32 2246822507, %v1695_v28 }
  0xcc   :  { %1643 = vmatpush.bf16.msra.mxu0 %v2807_v52  ;;  %v2631_v35 = vor.u32 %v3165_v26, %v2628_v9  ;;  %v1337_v52 = vadd.f32 %v3529_v42, %v1324_v49  ;;  %v286_v26 = vperm.slane %v3534_v18, 1 }
  0xcd   :  { %1605 = vmatpush.bf16.msrb.mxu1 %v2407_v46  ;;  %v1703_v46 = vshrl.u32 %v1699_v38, 13 }
  0xce   :  { %1630 = vmatpush.bf16.msra.mxu2 %v2679_v44  ;;  %v3247_v44 = vld [vmem:[#allocation10 + $0x78] sm:$0xff]  ;;  %v1350_v33 = vadd.f32 %v3531_v47, %v1337_v52  ;;  %v3252_v52 = vld [vmem:[#allocation10 + $0xa0] sm:$0xff] }
  0xcf   :  { %1617 = vmatpush.bf16.msra.mxu3 %v2551_v43  ;;  %v1388_v43 = vpop.f32.mrf.mxu2 }
  0xd0   :  { %1644 = vmatpush.bf16.msra.mxu0 %v2791_v6  ;;  %v3233_v6 = vld [vmem:[#allocation10 + $0x8] sm:$0xff] }
  0xd1   :  { %1606 = vmatpush.bf16.msrb.mxu1 %v2391_v2 }
  0xd2   :  { %1631 = vmatpush.bf16.msra.mxu2 %v2663_v63 }
  0xd3   :  { %1618 = vmatpush.bf16.msra.mxu3 %v2535_v62 }
  0xd4   :  { %1645 = vmatpush.bf16.msra.mxu0 %v2775_v25  ;;  %v1362_v50 = vpop.f32.mrf.mxu0 }
  0xd5   :  { %1607 = vmatpush.bf16.msrb.mxu1 %v2375_v19  ;;  %v1375_v54 = vpop.f32.mrf.mxu1  ;;  %v1363_v59 = vadd.f32 %v1362_v50, %v1350_v33 }
  0xd6   :  { %1632 = vmatpush.bf16.msra.mxu2 %v2647_v17 }
  0xd7   :  { %1619 = vmatpush.bf16.msra.mxu3 %v2519_v16  ;;  %v1390_v55 = vpop.f32.mrf.mxu2  ;;  %v1376_v3 = vadd.f32 %v1375_v54, %v1363_v59  ;;  %v3241_v16 = vld [vmem:[#allocation10 + $0x48] sm:$0xff] }
  0xd8   :  { %1608 = vmatmul.bf16.vlgmr.msrb.gmra.mxu1 %v3474_v53  ;;  %1646 = vmatpush.bf16.msra.mxu0 %v2759_v37  ;;  %v1707_v53 = vxor.u32 %v1703_v46, %v1699_v38  ;;  %v1677_v55 = vadd.s32 256, %v3516_v57 }
  0xd9   :  { %1659 = vmatpush.bf16.msra.mxu1 %v2887_v27  ;;  %v1389_v10 = vadd.f32 %v1388_v43, %v1376_v3  ;;  %v3254_v43 = vld [vmem:[#allocation10 + $0xb0] sm:$0xff] }
  0xda   :  { %1633 = vmatpush.bf16.msra.mxu2 %v2631_v35  ;;  %v1711_v58 = vmul.u32 3266489909, %v1707_v53  ;;  %v3253_v53 = vld [vmem:[#allocation10 + $0xa8] sm:$0xff] }
  0xdb   :  { %1620 = vmatpush.bf16.msra.mxu3 %v2503_v32  ;;  %1647 = vmatmul.bf16.vlgmr.msra.gmra.mxu0 %v3492_v39  ;;  %v1676_v39 = vadd.s32 128, %v3516_v57  ;;  %v1665_v15 = vmax.f32 %v1389_v10, 0.0 }
  0xdc   :  { %v1715_v61 = vshrl.u32 %v1711_v58, 16  ;;  %v1364_v63 = vpop.f32.mrf.mxu0 }
  0xdd   :  { %2016 = vmatpush.bf16.msrb.mxu1 %v3247_v44  ;;  %1634 = vmatmul.bf16.vlgmr.msra.gmra.mxu2 %v3490_v34  ;;  %v3235_v34 = vld [vmem:[#allocation10 + $0x18] sm:$0xff]  ;;  %v1401_v62 = vpop.f32.mrf.mxu3  ;;  %v1377_v42 = vpop.f32.mrf.mxu1  ;;  %v1681_v47 = vadd.s32 %v3518_v23, %v1676_v39  ;;  %v3025_v19 = vpack.c.bf16 %v1665_v15, %v1665_v15  ;;  %v3250_v39 = vld [vmem:[#allocation10 + $0x90] sm:$0xff] }
  0xde   :  { %1621 = vmatmul.bf16.vlgmr.msra.gmra.mxu3 %v3478_v60  ;;  %v3245_v60 = vld [vmem:[#allocation10 + $0x68] sm:$0xff]  ;;  %v1719_v4 = vxor.u32 %v1715_v61, %v1711_v58  ;;  %v1402_v28 = vadd.f32 %v1401_v62, %v286_v26  ;;  %2029 = vmatpush.bf16.msrb.mxu2 %v3255_v40 }
  0xdf   :  { %2003 = vmatpush.bf16.msrb.mxu3 %v3239_v36  ;;  %v1688_v8 = vadd.s32 %v3527_v41, %v1681_v47  ;;  %v3249_v42 = vld [vmem:[#allocation10 + $0x88] sm:$0xff] }
  0xe0   :  { %v1414_v2 = vpop.f32.mrf.mxu2  ;;  %v2892_v11 = vxor.u32 2147483648, %v1719_v4 }
  0xe1   :  { %2017 = vmatpush.bf16.msrb.mxu1 %v3246_v51  ;;  %v1692_v14 = vshrl.u32 %v1688_v8, 16  ;;  %v1415_v35 = vadd.f32 %v1414_v2, %v1402_v28 }
  0xe2   :  { %vm1725_vm1 = vcmp.ge.s32.totalorder %v2892_v11, 3006477107  ;;  %2030 = vmatpush.bf16.msrb.mxu2 %v3254_v43 }
  0xe3   :  { %2004 = vmatpush.bf16.msrb.mxu3 %v3238_v45  ;;  %vm3024_vm2 = vmpackc.low %vm1725_vm1, %vm1725_vm1  ;;  %v1696_v17 = vxor.u32 %v1692_v14, %v1688_v8 }
  0xe5   :  { %2018 = vmatpush.bf16.msrb.mxu1 %v3245_v60  ;;  %v1403_v12 = vpop.f32.mrf.mxu3  ;;  %v1700_v21 = vmul.u32 2246822507, %v1696_v17  ;;  %v1682_v60 = vadd.s32 %v3518_v23, %v1677_v55  ;;  %v288_v55 = vperm.slane %v3534_v18, 3 }
  0xe6   :  { %2031 = vmatpush.bf16.msrb.mxu2 %v3253_v53  ;;  %v3262_v12 = vld [vmem:[#allocation10 + $0xf0] sm:$0xff] }
  0xe7   :  { %2005 = vmatpush.bf16.msrb.mxu3 %v3237_v22  ;;  %v1704_v25 = vshrl.u32 %v1700_v21, 13  ;;  %v1689_v62 = vadd.s32 %v3527_v41, %v1682_v60 }
  0xe8   :  { %2891 = vmatmul.msk.bf16.vlgmr.msra.gmra.mxu1 %vm1297_vm0, %v3486_v48  ;;  %v3232_v48 = vld [vmem:[#allocation10] sm:$0xff]  ;;  %v1416_v13 = vpop.f32.mrf.mxu2 }
  0xe9   :  { %2019 = vmatpush.bf16.msrb.mxu1 %v3244_v0  ;;  %v1708_v27 = vxor.u32 %v1704_v25, %v1700_v21  ;;  %v1693_v0 = vshrl.u32 %v1689_v62, 16  ;;  %v3260_v21 = vld [vmem:[#allocation10 + $0xe0] sm:$0xff] }
  0xea   :  { %2032 = vmatpush.bf16.msrb.mxu2 %v3252_v52 }
  0xeb   :  { %2006 = vmatpush.bf16.msrb.mxu3 %v3236_v56  ;;  %v1712_v31 = vmul.u32 3266489909, %v1708_v27  ;;  %v1697_v47 = vxor.u32 %v1693_v0, %v1689_v62 }
  0xed   :  { %2020 = vmatpush.bf16.msrb.mxu1 %v3243_v5  ;;  %v1716_v38 = vshrl.u32 %v1712_v31, 16  ;;  %v3248_v5 = vld [vmem:[#allocation10 + $0x80] sm:$0xff] }
  0xef   :  { %2007 = vmatpush.bf16.msrb.mxu3 %v3235_v34  ;;  %v1720_v46 = vxor.u32 %v1716_v38, %v1712_v31  ;;  %v3251_v34 = vld [vmem:[#allocation10 + $0x98] sm:$0xff]  ;;  %v3258_v38 = vld [vmem:[#allocation10 + $0xd0] sm:$0xff] }
  0xf0   :  { %2033 = vmatpush.bf16.msrb.mxu2 %v3251_v34 }
  0xf1   :  { %2021 = vmatpush.bf16.msrb.mxu1 %v3242_v7  ;;  %v2893_v50 = vxor.u32 2147483648, %v1720_v46  ;;  %v3263_v7 = vld [vmem:[#allocation10 + $0xf8] sm:$0xff]  ;;  %v3257_v46 = vld [vmem:[#allocation10 + $0xc8] sm:$0xff] }
  0xf2   :  { %2042 = vmatpush.bf16.msrb.mxu0 %v3263_v7 }
  0xf3   :  { %2008 = vmatpush.bf16.msrb.mxu3 %v3234_v1  ;;  %vm1728_vm3 = vcmp.ge.s32.totalorder %v2893_v50, 3006477107  ;;  %v3256_v50 = vld [vmem:[#allocation10 + $0xc0] sm:$0xff] }
  0xf4   :  { %v1427_v24 = vpop.f32.mrf.mxu0  ;;  %vm3027_vm4 = vmpackc.low %vm1728_vm3, %vm1728_vm3  ;;  %2034 = vmatpush.bf16.msrb.mxu2 %v3250_v39 }
  0xf5   :  { %2022 = vmatpush.bf16.msrb.mxu1 %v3241_v16  ;;  %v1440_v9 = vpop.f32.mrf.mxu1  ;;  %v1428_v37 = vadd.f32 %v1427_v24, %v1415_v35  ;;  %v1678_v24 = vadd.s32 384, %v3516_v57 }
  0xf6   :  { %2043 = vmatpush.bf16.msrb.mxu0 %v3262_v12 }
  0xf7   :  { %2009 = vmatpush.bf16.msrb.mxu3 %v3233_v6  ;;  %v1441_v45 = vadd.f32 %v1440_v9, %v1428_v37  ;;  %v1701_v6 = vmul.u32 2246822507, %v1697_v47  ;;  %v1683_v27 = vadd.s32 %v3518_v23, %v1678_v24 }
  0xf8   :  { %2035 = vmatpush.bf16.msrb.mxu2 %v3249_v42 }
  0xf9   :  { %2023 = vmatpush.bf16.msrb.mxu1 %v3240_v20  ;;  %v1705_v11 = vshrl.u32 %v1701_v6, 13 }
  0xfb   :  { %2010 = vmatpush.bf16.msrb.mxu3 %v3232_v48  ;;  %v287_v48 = vperm.slane %v3534_v18, 2  ;;  %v1709_v14 = vxor.u32 %v1705_v11, %v1701_v6 }
  0xfc   :  { %v1429_v30 = vpop.f32.mrf.mxu0  ;;  %2036 = vmatpush.bf16.msrb.mxu2 %v3248_v5 }
  0xfd   :  { %v1453_v29 = vpop.f32.mrf.mxu3  ;;  %v1442_v36 = vpop.f32.mrf.mxu1  ;;  %v1713_v17 = vmul.u32 3266489909, %v1709_v14 }
  0xfe   :  { %3026 = vmatmul.msk.bf16.vlgmr.msrb.gmra.mxu3 %vm3024_vm2, %v3025_v19  ;;  %v1454_v22 = vadd.f32 %v1453_v29, %v1441_v45  ;;  %v3261_v19 = vld [vmem:[#allocation10 + $0xe8] sm:$0xff]  ;;  %v3259_v29 = vld [vmem:[#allocation10 + $0xd8] sm:$0xff] }
  0xff   :  { %2044 = vmatpush.bf16.msrb.mxu0 %v3261_v19  ;;  %v1717_v26 = vshrl.u32 %v1713_v17, 16 }
 0x100   :  { %v1466_v32 = vpop.f32.mrf.mxu2 }
 0x101   :  { %v1467_v51 = vadd.f32 %v1466_v32, %v1454_v22  ;;  %v1721_v28 = vxor.u32 %v1717_v26, %v1713_v17  ;;  %v1690_v32 = vadd.s32 %v3527_v41, %v1683_v27 }
 0x103   :  { %2045 = vmatpush.bf16.msrb.mxu0 %v3260_v21  ;;  %v2894_v37 = vxor.u32 2147483648, %v1721_v28 }
 0x105   :  { %v1455_v44 = vpop.f32.mrf.mxu3  ;;  %vm1731_vm5 = vcmp.ge.s32.totalorder %v2894_v37, 3006477107 }
 0x106   :  { %v1694_v44 = vshrl.u32 %v1690_v32, 16  ;;  %vm3030_vm6 = vmpackc.low %vm1731_vm5, %vm1731_vm5 }
 0x107   :  { %2046 = vmatpush.bf16.msrb.mxu0 %v3259_v29 }
 0x108   :  { %v1468_v49 = vpop.f32.mrf.mxu2  ;;  %v1698_v22 = vxor.u32 %v1694_v44, %v1690_v32 }
 0x10a   :  { %v1702_v52 = vmul.u32 2246822507, %v1698_v22 }
 0x10b   :  { %2047 = vmatpush.bf16.msrb.mxu0 %v3258_v38 }
 0x10d   :  { %v1479_v54 = vpop.f32.mrf.mxu3 }
 0x10e   :  { %v1480_v56 = vadd.f32 %v1479_v54, %v1467_v51  ;;  %v1706_v54 = vshrl.u32 %v1702_v52, 13 }
 0x10f   :  { %2048 = vmatpush.bf16.msrb.mxu0 %v3257_v46 }
 0x110   :  { %v1666_v58 = vmax.f32 %v1480_v56, 0.0  ;;  %v1710_v56 = vxor.u32 %v1706_v54, %v1702_v52 }
 0x112   :  { %v3028_v33 = vpack.c.bf16 %v1666_v58, %v1666_v58 }
 0x113   :  { %2049 = vmatpush.bf16.msrb.mxu0 %v3256_v50 }
 0x114   :  { %3029 = vmatmul.msk.bf16.vlgmr.msrb.gmra.mxu1 %vm3027_vm4, %v3028_v33  ;;  %v1518_v61 = vpop.f32.mrf.mxu0  ;;  %v1714_v33 = vmul.u32 3266489909, %v1710_v56 }
 0x115   :  { %v1481_v59 = vpop.f32.mrf.mxu3  ;;  %v1492_v63 = vpop.f32.mrf.mxu1 }
 0x116   :  { %v1493_v15 = vadd.f32 %v1492_v63, %v287_v48  ;;  %v1718_v59 = vshrl.u32 %v1714_v33, 16 }
 0x118   :  { %v1722_v0 = vxor.u32 %v1718_v59, %v1714_v33 }
 0x11c   :  { %v1520_v2 = vpop.f32.mrf.mxu0 }
 0x11d   :  { %v1494_v4 = vpop.f32.mrf.mxu1 }
 0x120   :  { %v1531_v3 = vpop.f32.mrf.mxu2 }
 0x121   :  { %v1505_v1 = vpop.f32.mrf.mxu3 }
 0x122   :  { %v1506_v20 = vadd.f32 %v1505_v1, %v1493_v15 }
 0x124   :  { %v1570_v10 = vpop.f32.mrf.mxu0  ;;  %v1519_v9 = vadd.f32 %v1518_v61, %v1506_v20 }
 0x126   :  { %v1532_v30 = vadd.f32 %v1531_v3, %v1519_v9  ;;  %v2895_v3 = vxor.u32 2147483648, %v1722_v0 }
 0x128   :  { %v1533_v13 = vpop.f32.mrf.mxu2  ;;  %vm1734_vm7 = vcmp.ge.s32.totalorder %v2895_v3, 3006477107 }
 0x129   :  { %v1507_v8 = vpop.f32.mrf.mxu3  ;;  %vm3033_vm8 = vmpackc.low %vm1734_vm7, %vm1734_vm7  ;;  %v3282_v13 = vld [vmem:[%s3570_s5] ss:$0 sm:$0xff]  ;;  %s3426_s5 = smov [#allocation12]  }
 0x12a   :  { %s2090_s21 = sshll.u32 %s3426_s5, 4  ;;  %s2091_s21 = int_to_ptr.vmem [resolvable:$true] %s2090_s21 }
 0x12c   :  { %v1572_v16 = vpop.f32.mrf.mxu0 }
 0x135   :  { %v1544_v25 = vpop.f32.mrf.mxu1 }
 0x136   :  { %v1545_v35 = vadd.f32 %v1544_v25, %v1532_v30  ;;  %v3425_v30 = vmov 10000.0  }
 0x138   :  { %v1596_v31 = vpop.f32.mrf.mxu0 }
 0x13d   :  { %v1546_v36 = vpop.f32.mrf.mxu1 }
 0x140   :  { %v1583_v57 = vpop.f32.mrf.mxu2  ;;  %v1598_v49 = vpop.f32.mrf.mxu0 }
 0x141   :  { %v1557_v40 = vpop.f32.mrf.mxu3  ;;  %v1584_v58 = vadd.f32 %v1583_v57, %v288_v55 }
 0x142   :  { %v1558_v43 = vadd.f32 %v1557_v40, %v1545_v35 }
 0x143   :  { %v1597_v34 = vadd.f32 %v1596_v31, %v1584_v58 }
 0x144   :  { %v1571_v45 = vadd.f32 %v1570_v10, %v1558_v43 }
 0x146   :  { %v1667_v23 = vmax.f32 %v1571_v45, 0.0 }
 0x148   :  { %v3031_v53 = vpack.c.bf16 %v1667_v23, %v1667_v23  ;;  %v1585_v51 = vpop.f32.mrf.mxu2 }
 0x149   :  { %v1559_v41 = vpop.f32.mrf.mxu3 }
 0x14a   :  { %3032 = vmatmul.msk.bf16.vlgmr.msrb.gmra.mxu2 %vm3030_vm6, %v3031_v53 }
 0x155   :  { %v1609_v60 = vpop.f32.mrf.mxu1 }
 0x156   :  { %v1610_v61 = vadd.f32 %v1609_v60, %v1597_v34 }
 0x158   :  { %v1648_v39 = vpop.f32.mrf.mxu0 }
 0x15d   :  { %v1611_v62 = vpop.f32.mrf.mxu1 }
 0x160   :  { %v1635_v1 = vpop.f32.mrf.mxu2  ;;  %v1650_v47 = vpop.f32.mrf.mxu0 }
 0x161   :  { %v1622_v63 = vpop.f32.mrf.mxu3 }
 0x162   :  { %v1623_v42 = vadd.f32 %v1622_v63, %v1610_v61 }
 0x164   :  { %v1636_v2 = vadd.f32 %v1635_v1, %v1623_v42 }
 0x165   :  { %v1661_v5 = vpop.f32.mrf.mxu1 }
 0x166   :  { %v1649_v4 = vadd.f32 %v1648_v39, %v1636_v2 }
 0x168   :  { %v1662_v6 = vadd.f32 %v1661_v5, %v1649_v4  ;;  %v1637_v7 = vpop.f32.mrf.mxu2 }
 0x169   :  { %v1624_v18 = vpop.f32.mrf.mxu3 }
 0x16a   :  { %v1668_v8 = vmax.f32 %v1662_v6, 0.0 }
 0x16c   :  { %v3034_v10 = vpack.c.bf16 %v1668_v8, %v1668_v8 }
 0x16d   :  { %v1663_v11 = vpop.f32.mrf.mxu1 }
 0x16e   :  { %3035 = vmatmul.msk.bf16.vlgmr.msrb.gmra.mxu0 %vm3033_vm8, %v3034_v10 }
 0x181   :  { %v2012_v12 = vpop.f32.mrf.mxu3 }
 0x182   :  { %v2013_v14 = vadd.f32 %v3282_v13, %v2012_v12 }
 0x189   :  { %v2014_v48 = vpop.f32.mrf.mxu3 }
 0x191   :  { %v2025_v15 = vpop.f32.mrf.mxu1 }
 0x192   :  { %v2026_v16 = vadd.f32 %v2025_v15, %v2013_v14 }
 0x199   :  { %v2027_v17 = vpop.f32.mrf.mxu1 }
 0x1cd   :  { %v2038_v19 = vpop.f32.mrf.mxu2 }
 0x1ce   :  { %v2039_v21 = vadd.f32 %v2038_v19, %v2026_v16 }
 0x1d5   :  { %v2040_v20 = vpop.f32.mrf.mxu2 }
 0x1eb   :  { %v2051_v24 = vpop.f32.mrf.mxu0 }
 0x1ec   :  { %v2052_v25 = vadd.f32 %v2051_v24, %v2039_v21 }
 0x1ee   :  { %v2055_v26 = vsub.f32 0.0, %v2052_v25 }
 0x1f0   :  { %v2056_v9 = vmul.f32 1.442695, %v2055_v26 }
 0x1f2   :  { %3283 = vpow2.f32 %v2056_v9 }
 0x1f3   :  { %v2053_v27 = vpop.f32.mrf.mxu0  ;;  %3285 = vrcp.f32 %v3425_v30 }
 0x1f8   :  { %v3284_v28 = vpop.eup %3283 }
 0x1f9   :  { %v2058_v29 = vadd.f32 1.0, %v3284_v28  ;;  %v3286_v31 = vpop.eup %3285 }
 0x1fa   :  { %v2077_v37 = vmul.f32 10000.0, %v3286_v31  ;;  %vm2081_vm13 = vweird.f32 %v3286_v31 }
 0x1fb   :  { %3287 = vrcp.f32 %v2058_v29  ;;  %v2070_v38 = vand.u32 2147483648, %v2058_v29  ;;  %v2068_v43 = vand.u32 2147483647, %v2058_v29  ;;  %vm2064_vm10 = vweird.f32 %v2058_v29 }
 0x1fc   :  { %v2078_v44 = vsub.f32 1.0, %v2077_v37 }
 0x1fd   :  { %v2071_v45 = vor.u32 1.1754944e-38, %v2070_v38  ;;  %vm2069_vm12 = vcmp.eq.f32.partialorder %v2068_v43, 8.507059e+37 }
 0x1fe   :  { %v2079_v22 = vmul.f32 %v3286_v31, %v2078_v44 }
 0x200   :  { %v2080_v41 = vadd.f32 %v3286_v31, %v2079_v22 }
 0x201   :  { %v3288_v32 = vpop.eup %3287 }
 0x202   :  { %v2060_v35 = vmul.f32 %v3288_v32, %v2058_v29  ;;  %vm2065_vm9 = vweird.f32 %v3288_v32  ;;  %v2082_v56 = vsel %vm2081_vm13, %v3286_v31, %v2080_v41 }
 0x203   :  { %vm2066_vm11 = vmor %vm2064_vm10, %vm2065_vm9 }
 0x204   :  { %v2061_v36 = vsub.f32 1.0, %v2060_v35 }
 0x206   :  { %v2062_v40 = vmul.f32 %v3288_v32, %v2061_v36 }
 0x208   :  { %v2063_v57 = vadd.f32 %v3288_v32, %v2062_v40 }
 0x20a   :  { %v2067_v46 = vsel %vm2066_vm11, %v3288_v32, %v2063_v57 }
 0x20b   :  { %v2072_v23 = vsel %vm2069_vm12, %v2071_v45, %v2067_v46 }
 0x20c   :  { %v2074_v49 = vmul.f32 10000.0, %v2072_v23 }
 0x20e   :  { %v3266_v53 = vcvt.f32.s32 %v2074_v49  ;;  %v3264_v51 = vand.u32 2147483647, %v2074_v49  ;;  %v3269_v54 = vand.u32 2147483648, %v2074_v49 }
 0x210   :  { %v3267_v50 = vcvt.s32.f32 %v3266_v53  ;;  %vm3265_vm14 = vcmp.lt.f32.partialorder %v3264_v51, 8388608.0 }
 0x212   :  { %v3268_v52 = vand.u32 2147483647, %v3267_v50 }
 0x214   :  { %v3270_v55 = vor.u32 %v3269_v54, %v3268_v52 }
 0x216   :  { %v3271_v58 = vsel %vm3265_vm14, %v3270_v55, %v2074_v49 }
 0x217   :  { %v2083_v60 = vmul.f32 %v3271_v58, %v2082_v56 }
 0x219   :  { %2084 = vst [vmem:[#allocation12] sm:$0xff] %v2083_v60 }
 0x21a   :  { %2095 = dma.vmem_to_hbm [thread:$0]  %s2091_s21, 128, %s2093_s24, [#allocation6]  }
 0x21b   :  { %3415 = dma.done.wait [#allocation6], 128  }
 0x21c   :  { %3416 = vsyncadd [#allocation6], 4294967168 }
 0x21d   :  { %2100 = vsyncpa [#allocation5], 1 }
 0x21e   :  { %2101 = vsyncpa [#allocation8], 1 }
 0x21f   :  { %2102 = vsyncpa [#allocation11], 1 }
 0x220   :  { %2103 = vsyncpa [#allocation6], 1 }

</bundles_post_ra>
